<compile_context>
chip_gen: v5e
topology: v5e:2x2
jax: 0.10.0
libtpu: 0.0.40
codegen_flags: <defaults>
</compile_context>

<pallas_src>
import math
import functools

import jax
import jax.numpy as jnp
from jax.experimental import pallas as pl
from jax.experimental.pallas import tpu as pltpu


# ----------------------------------------------------------------------------
# Activation helper (shared by kernel and reference)
# ----------------------------------------------------------------------------

def _gelu_tanh(x):
    # TODO(synk): original BERT uses erf-based GELU; tanh approximation used here.
    c = math.sqrt(2.0 / math.pi)
    return 0.5 * x * (1.0 + jnp.tanh(c * (x + 0.044715 * x * x * x)))


# ----------------------------------------------------------------------------
# Fused BERT forward kernel (single invocation, no grid)
# ----------------------------------------------------------------------------

def _bert_fused_kernel(ids_ref, mask_ref,
                       wemb_ref, pemb_ref, temb_ref,
                       emb_g_ref, emb_b_ref,
                       wq_ref, bq_ref, wk_ref, bk_ref, wv_ref, bv_ref,
                       wo_ref, bo_ref,
                       ln1g_ref, ln1b_ref,
                       w1_ref, b1_ref, w2_ref, b2_ref,
                       ln2g_ref, ln2b_ref,
                       poolw_ref, poolb_ref, fcw_ref, fcb_ref,
                       out_ref,
                       *, B, S, H, nH, Dh, L, V, eps):

    def layernorm(x, g, b):
        mu = jnp.mean(x, axis=-1, keepdims=True)
        xc = x - mu
        var = jnp.mean(xc * xc, axis=-1, keepdims=True)
        return xc * jax.lax.rsqrt(var + eps) * g + b

    # ---- embeddings: one-hot gather on the MXU (vocab == 128 lanes) ----
    ids = ids_ref[...]                                            # [B*S, 1] int32
    vocab_iota = jax.lax.broadcasted_iota(jnp.int32, (B * S, V), 1)
    onehot = (vocab_iota == ids).astype(jnp.float32)              # [B*S, V]
    emb = jnp.dot(onehot, wemb_ref[...],
                  preferred_element_type=jnp.float32)             # [B*S, H]
    pos = pemb_ref[0:S, :]                                        # [S, H]
    emb = emb + jnp.concatenate([pos] * B, axis=0) + temb_ref[0:1, :]
    h = layernorm(emb, emb_g_ref[...], emb_b_ref[...])            # [B*S, H]

    # additive attention mask computed in-kernel
    add_mask = (1.0 - mask_ref[...]) * -10000.0                   # [B, S]

    for l in range(L):                                            # static unroll
        # ---- attention, per head; all slabs start at lane 0 ----
        attn = None
        for n in range(nH):
            ln_i = l * nH + n
            qh = (jnp.dot(h, wq_ref[ln_i], preferred_element_type=jnp.float32)
                  + bq_ref[ln_i])                                 # [B*S, Dh] (pre-scaled)
            kh = (jnp.dot(h, wk_ref[ln_i], preferred_element_type=jnp.float32)
                  + bk_ref[ln_i])
            vh = (jnp.dot(h, wv_ref[ln_i], preferred_element_type=jnp.float32)
                  + bv_ref[ln_i])
            ctx_parts = []
            for b in range(B):                                    # S=8 -> sublane-aligned
                r0, r1 = b * S, (b + 1) * S
                s = jax.lax.dot_general(
                    qh[r0:r1], kh[r0:r1], (((1,), (1,)), ((), ())),
                    preferred_element_type=jnp.float32)           # [S, S]
                s = s + add_mask[b:b + 1, :]                      # broadcast over queries
                m = jnp.max(s, axis=-1, keepdims=True)
                p = jnp.exp(s - m)
                denom = jnp.sum(p, axis=-1, keepdims=True)
                p = p * pl.reciprocal(denom, approx=True)         # EUP, not VALU div
                ctx_parts.append(jnp.dot(p, vh[r0:r1],
                                         preferred_element_type=jnp.float32))
            ctx = jnp.concatenate(ctx_parts, axis=0)              # [B*S, Dh]
            contrib = jnp.dot(ctx, wo_ref[ln_i],
                              preferred_element_type=jnp.float32) # [B*S, H]
            attn = contrib if attn is None else attn + contrib
        attn = attn + bo_ref[l]
        h = layernorm(h + attn, ln1g_ref[l], ln1b_ref[l])

        # ---- feed-forward + residual folded into LayerNorm ----
        ff = (jnp.dot(h, w1_ref[l], preferred_element_type=jnp.float32)
              + b1_ref[l])
        ff = _gelu_tanh(ff)
        ff = (jnp.dot(ff, w2_ref[l], preferred_element_type=jnp.float32)
              + b2_ref[l])
        h = layernorm(h + ff, ln2g_ref[l], ln2b_ref[l])

    # ---- pooler (tanh on first token) + classifier on B rows only ----
    first = jnp.concatenate([h[b * S:b * S + 1, :] for b in range(B)], axis=0)  # [B, H]
    pooled = jnp.tanh(jnp.dot(first, poolw_ref[...],
                              preferred_element_type=jnp.float32)
                      + poolb_ref[...])                           # [B, H]
    out_ref[...] = (jnp.dot(pooled, fcw_ref[...],
                            preferred_element_type=jnp.float32)
                    + fcb_ref[...])                               # [B, C]


# ----------------------------------------------------------------------------
# Synthetic BERT config / params
# ----------------------------------------------------------------------------

class Config:
    vocab_size = 128
    hidden_size = 32
    num_heads = 2
    num_layers = 2
    intermediate_size = 64
    max_position = 32
    type_vocab = 2
    num_classes = 4
    seq_len = 8
    batch = 2


def init_params(key, cfg):
    H, I = cfg.hidden_size, cfg.intermediate_size
    scale = 0.02

    def nrm(k, shape):
        return scale * jax.random.normal(k, shape, dtype=jnp.float32)

    keys = iter(jax.random.split(key, 64))
    p = {
        "word_emb": nrm(next(keys), (cfg.vocab_size, H)),
        "pos_emb": nrm(next(keys), (cfg.max_position, H)),
        "type_emb": nrm(next(keys), (cfg.type_vocab, H)),
        "emb_ln_g": jnp.ones((H,), jnp.float32),
        "emb_ln_b": jnp.zeros((H,), jnp.float32),
        "layers": [],
        "pool_w": nrm(next(keys), (H, H)),
        "pool_b": jnp.zeros((H,), jnp.float32),
        "fc_w": nrm(next(keys), (H, cfg.num_classes)),
        "fc_b": jnp.zeros((cfg.num_classes,), jnp.float32),
    }
    for _ in range(cfg.num_layers):
        layer = {
            "wq": nrm(next(keys), (H, H)), "bq": jnp.zeros((H,), jnp.float32),
            "wk": nrm(next(keys), (H, H)), "bk": jnp.zeros((H,), jnp.float32),
            "wv": nrm(next(keys), (H, H)), "bv": jnp.zeros((H,), jnp.float32),
            "wo": nrm(next(keys), (H, H)), "bo": jnp.zeros((H,), jnp.float32),
            "ln1_g": jnp.ones((H,), jnp.float32),
            "ln1_b": jnp.zeros((H,), jnp.float32),
            "w1": nrm(next(keys), (H, I)), "b1": jnp.zeros((I,), jnp.float32),
            "w2": nrm(next(keys), (I, H)), "b2": jnp.zeros((H,), jnp.float32),
            "ln2_g": jnp.ones((H,), jnp.float32),
            "ln2_b": jnp.zeros((H,), jnp.float32),
        }
        p["layers"].append(layer)
    return p


# ----------------------------------------------------------------------------
# One-time weight pre-packing (done at init, NOT per forward call)
# ----------------------------------------------------------------------------

def prepack_params(params, cfg):
    H, I, nH, C = (cfg.hidden_size, cfg.intermediate_size,
                   cfg.num_heads, cfg.num_classes)
    Dh = H // nH
    scale = 1.0 / math.sqrt(Dh)
    ls = params["layers"]

    def per_head_cols(w):        # [H, H] -> [nH, H, Dh]  (split output columns)
        return w.reshape(H, nH, Dh).transpose(1, 0, 2)

    def per_head_rows(w):        # [H, H] -> [nH, Dh, H]  (split input rows)
        return w.reshape(nH, Dh, H)

    # softmax scale folded into the Q projection
    wq = jnp.concatenate([per_head_cols(lp["wq"]) * scale for lp in ls], axis=0)
    bq = jnp.concatenate([(lp["bq"] * scale).reshape(nH, 1, Dh) for lp in ls], axis=0)
    wk = jnp.concatenate([per_head_cols(lp["wk"]) for lp in ls], axis=0)
    bk = jnp.concatenate([lp["bk"].reshape(nH, 1, Dh) for lp in ls], axis=0)
    wv = jnp.concatenate([per_head_cols(lp["wv"]) for lp in ls], axis=0)
    bv = jnp.concatenate([lp["bv"].reshape(nH, 1, Dh) for lp in ls], axis=0)
    wo = jnp.concatenate([per_head_rows(lp["wo"]) for lp in ls], axis=0)
    bo = jnp.stack([lp["bo"].reshape(1, H) for lp in ls])
    ln1g = jnp.stack([lp["ln1_g"].reshape(1, H) for lp in ls])
    ln1b = jnp.stack([lp["ln1_b"].reshape(1, H) for lp in ls])
    w1 = jnp.stack([lp["w1"] for lp in ls])
    b1 = jnp.stack([lp["b1"].reshape(1, I) for lp in ls])
    w2 = jnp.stack([lp["w2"] for lp in ls])
    b2 = jnp.stack([lp["b2"].reshape(1, H) for lp in ls])
    ln2g = jnp.stack([lp["ln2_g"].reshape(1, H) for lp in ls])
    ln2b = jnp.stack([lp["ln2_b"].reshape(1, H) for lp in ls])

    packed = (
        params["word_emb"], params["pos_emb"], params["type_emb"],
        params["emb_ln_g"].reshape(1, H), params["emb_ln_b"].reshape(1, H),
        wq, bq, wk, bk, wv, bv, wo, bo,
        ln1g, ln1b, w1, b1, w2, b2, ln2g, ln2b,
        params["pool_w"], params["pool_b"].reshape(1, H),
        params["fc_w"], params["fc_b"].reshape(1, C),
    )
    return jax.tree_util.tree_map(jnp.asarray, packed)


# ----------------------------------------------------------------------------
# Model forward (mirrors Model.forward: context = x[0], mask = x[2])
# ----------------------------------------------------------------------------

def bert_classifier_forward(packed, x, cfg):
    context = x[0]          # [B, S] int32 token ids
    mask = x[2]             # [B, S] attention mask (1 = keep)

    B, S = context.shape
    H, nH = cfg.hidden_size, cfg.num_heads
    L, C, V = cfg.num_layers, cfg.num_classes, cfg.vocab_size
    Dh = H // nH

    ids = context.reshape(B * S, 1).astype(jnp.int32)
    mask_f = mask.astype(jnp.float32)

    inputs = (ids, mask_f) + packed

    kernel = functools.partial(_bert_fused_kernel,
                               B=B, S=S, H=H, nH=nH, Dh=Dh, L=L, V=V, eps=1e-12)

    return pl.pallas_call(
        kernel,
        out_shape=jax.ShapeDtypeStruct((B, C), jnp.float32),
        in_specs=[pl.BlockSpec(memory_space=pltpu.MemorySpace.VMEM)
                  for _ in inputs],
        out_specs=pl.BlockSpec(memory_space=pltpu.MemorySpace.VMEM),
    )(*inputs)


# ----------------------------------------------------------------------------
# Pure-JAX reference (same math) for correctness checking
# ----------------------------------------------------------------------------

def bert_reference(params, x, cfg):
    context = x[0]
    mask = x[2]
    B, S = context.shape
    H, nH = cfg.hidden_size, cfg.num_heads
    Dh = H // nH

    positions = jnp.arange(S, dtype=jnp.int32)
    token_type = jnp.zeros((B, S), jnp.int32)
    emb = (jnp.take(params["word_emb"], context, axis=0)
           + jnp.take(params["pos_emb"], positions, axis=0)[None, :, :]
           + jnp.take(params["type_emb"], token_type, axis=0))

    def ln(x_, g, b, eps=1e-12):
        mu = x_.mean(-1, keepdims=True)
        var = ((x_ - mu) ** 2).mean(-1, keepdims=True)
        return (x_ - mu) * jax.lax.rsqrt(var + eps) * g + b

    h = ln(emb, params["emb_ln_g"], params["emb_ln_b"])            # [B, S, H]
    add_mask = (1.0 - mask.astype(jnp.float32)) * -10000.0         # [B, S]

    for lp in params["layers"]:
        q = h @ lp["wq"] + lp["bq"]
        k = h @ lp["wk"] + lp["bk"]
        v = h @ lp["wv"] + lp["bv"]

        def split(t):
            return t.reshape(B, S, nH, Dh).transpose(0, 2, 1, 3)

        qh, kh, vh = split(q), split(k), split(v)
        s = jnp.einsum("bhqd,bhkd->bhqk", qh, kh) / math.sqrt(Dh)
        s = s + add_mask[:, None, None, :]
        p = jax.nn.softmax(s, axis=-1)
        ctx = jnp.einsum("bhqk,bhkd->bhqd", p, vh)
        ctx = ctx.transpose(0, 2, 1, 3).reshape(B, S, H)
        attn = ctx @ lp["wo"] + lp["bo"]
        h = ln(h + attn, lp["ln1_g"], lp["ln1_b"])

        ff = _gelu_tanh(h @ lp["w1"] + lp["b1"])
        ff = ff @ lp["w2"] + lp["b2"]
        h = ln(h + ff, lp["ln2_g"], lp["ln2_b"])

    pooled = jnp.tanh(h[:, 0, :] @ params["pool_w"] + params["pool_b"])
    return pooled @ params["fc_w"] + params["fc_b"]


# ----------------------------------------------------------------------------
# main
# ----------------------------------------------------------------------------

if __name__ == "__main__":
    cfg = Config()
    key = jax.random.PRNGKey(0)
    k_params, k_ids = jax.random.split(key)

    params = init_params(k_params, cfg)
    packed = prepack_params(params, cfg)          # one-time prepack at init
    packed = jax.block_until_ready(packed)

    B, S = cfg.batch, cfg.seq_len
    context = jax.random.randint(k_ids, (B, S), 0, cfg.vocab_size,
                                 dtype=jnp.int32)
    seq_len = jnp.full((B,), S, jnp.int32)            # unused (matches x[1])
    mask = jnp.ones((B, S), jnp.float32)
    mask = mask.at[1, S - 2:].set(0.0)                # pad last 2 tokens of sample 1

    x = (context, seq_len, mask)

    out = bert_classifier_forward(packed, x, cfg)
    out = jax.block_until_ready(out)

    assert out.shape == (B, cfg.num_classes)
    assert jnp.all(jnp.isfinite(out))

    ref = bert_reference(params, x, cfg)
    assert jnp.allclose(out, ref, atol=2e-3, rtol=2e-2), (
        "max abs diff", float(jnp.max(jnp.abs(out - ref))))

    print("KERNEL_OK")
</pallas_src>

<mosaic_0001>
module attributes {stable_mosaic.version = 11 : i64} {
  func.func @_bert_fused_kernel(%arg0: memref<16x1xi32, #tpu.memory_space<vmem>>, %arg1: memref<2x8xf32, #tpu.memory_space<vmem>>, %arg2: memref<128x32xf32, #tpu.memory_space<vmem>>, %arg3: memref<32x32xf32, #tpu.memory_space<vmem>>, %arg4: memref<2x32xf32, #tpu.memory_space<vmem>>, %arg5: memref<1x32xf32, #tpu.memory_space<vmem>>, %arg6: memref<1x32xf32, #tpu.memory_space<vmem>>, %arg7: memref<4x32x16xf32, #tpu.memory_space<vmem>>, %arg8: memref<4x1x16xf32, #tpu.memory_space<vmem>>, %arg9: memref<4x32x16xf32, #tpu.memory_space<vmem>>, %arg10: memref<4x1x16xf32, #tpu.memory_space<vmem>>, %arg11: memref<4x32x16xf32, #tpu.memory_space<vmem>>, %arg12: memref<4x1x16xf32, #tpu.memory_space<vmem>>, %arg13: memref<4x16x32xf32, #tpu.memory_space<vmem>>, %arg14: memref<2x1x32xf32, #tpu.memory_space<vmem>>, %arg15: memref<2x1x32xf32, #tpu.memory_space<vmem>>, %arg16: memref<2x1x32xf32, #tpu.memory_space<vmem>>, %arg17: memref<2x32x64xf32, #tpu.memory_space<vmem>>, %arg18: memref<2x1x64xf32, #tpu.memory_space<vmem>>, %arg19: memref<2x64x32xf32, #tpu.memory_space<vmem>>, %arg20: memref<2x1x32xf32, #tpu.memory_space<vmem>>, %arg21: memref<2x1x32xf32, #tpu.memory_space<vmem>>, %arg22: memref<2x1x32xf32, #tpu.memory_space<vmem>>, %arg23: memref<32x32xf32, #tpu.memory_space<vmem>>, %arg24: memref<1x32xf32, #tpu.memory_space<vmem>>, %arg25: memref<32x4xf32, #tpu.memory_space<vmem>>, %arg26: memref<1x4xf32, #tpu.memory_space<vmem>>, %arg27: memref<2x4xf32, #tpu.memory_space<vmem>>) attributes {dimension_semantics = [], scalar_prefetch = 0 : i64, scratch_operands = 0 : i64, tpu.core_type = #tpu.core_type<tc>} {
    %c0 = arith.constant 0 : index
    %c0_0 = arith.constant 0 : index
    %0 = vector.load %arg0[%c0, %c0_0] : memref<16x1xi32, #tpu.memory_space<vmem>>, vector<16x1xi32>
    %1 = tpu.iota {dimensions = array<i32: 1>} : vector<16x128xi32>
    %2 = vector.broadcast %0 : vector<16x1xi32> to vector<16x128xi32>
    %3 = arith.cmpi eq, %1, %2 : vector<16x128xi32>
    %4 = arith.extui %3 : vector<16x128xi1> to vector<16x128xi32>
    %5 = arith.sitofp %4 : vector<16x128xi32> to vector<16x128xf32>
    %c0_1 = arith.constant 0 : index
    %c0_2 = arith.constant 0 : index
    %6 = vector.load %arg2[%c0_1, %c0_2] : memref<128x32xf32, #tpu.memory_space<vmem>>, vector<128x32xf32>
    %cst = arith.constant dense<0.000000e+00> : vector<16x32xf32>
    %7 = tpu.matmul %5, %6, %cst {dimension_numbers = #tpu.dot_dimension_numbers<[1], [0], [0], [1], [0, 0, 1, 1], [], []>} : vector<16x128xf32>, vector<128x32xf32>, vector<16x32xf32> -> vector<16x32xf32>
    %c0_3 = arith.constant 0 : index
    %c0_4 = arith.constant 0 : index
    %8 = vector.load %arg3[%c0_3, %c0_4] : memref<32x32xf32, #tpu.memory_space<vmem>>, vector<8x32xf32>
    %9 = tpu.concatenate %8, %8 in 0 : vector<8x32xf32>, vector<8x32xf32> -> vector<16x32xf32>
    %10 = arith.addf %7, %9 : vector<16x32xf32>
    %c0_5 = arith.constant 0 : index
    %c0_6 = arith.constant 0 : index
    %11 = vector.load %arg4[%c0_5, %c0_6] : memref<2x32xf32, #tpu.memory_space<vmem>>, vector<1x32xf32>
    %12 = vector.broadcast %11 : vector<1x32xf32> to vector<16x32xf32>
    %13 = arith.addf %10, %12 : vector<16x32xf32>
    %c0_7 = arith.constant 0 : index
    %c0_8 = arith.constant 0 : index
    %14 = vector.load %arg5[%c0_7, %c0_8] : memref<1x32xf32, #tpu.memory_space<vmem>>, vector<1x32xf32>
    %c0_9 = arith.constant 0 : index
    %c0_10 = arith.constant 0 : index
    %15 = vector.load %arg6[%c0_9, %c0_10] : memref<1x32xf32, #tpu.memory_space<vmem>>, vector<1x32xf32>
    %cst_11 = arith.constant dense<0.000000e+00> : vector<16xf32>
    %16 = vector.multi_reduction <add>, %13, %cst_11 [1] : vector<16x32xf32> to vector<16xf32>
    %17 = vector.shape_cast %16 : vector<16xf32> to vector<16x1xf32>
    %cst_12 = arith.constant 3.200000e+01 : f32
    %18 = vector.broadcast %cst_12 : f32 to vector<16x1xf32>
    %19 = arith.divf %17, %18 : vector<16x1xf32>
    %20 = vector.broadcast %19 : vector<16x1xf32> to vector<16x32xf32>
    %21 = arith.subf %13, %20 : vector<16x32xf32>
    %22 = arith.mulf %21, %21 : vector<16x32xf32>
    %cst_13 = arith.constant dense<0.000000e+00> : vector<16xf32>
    %23 = vector.multi_reduction <add>, %22, %cst_13 [1] : vector<16x32xf32> to vector<16xf32>
    %24 = vector.shape_cast %23 : vector<16xf32> to vector<16x1xf32>
    %cst_14 = arith.constant 3.200000e+01 : f32
    %25 = vector.broadcast %cst_14 : f32 to vector<16x1xf32>
    %26 = arith.divf %24, %25 : vector<16x1xf32>
    %cst_15 = arith.constant 9.99999996E-13 : f32
    %27 = vector.broadcast %cst_15 : f32 to vector<16x1xf32>
    %28 = arith.addf %26, %27 : vector<16x1xf32>
    %29 = math.rsqrt %28 : vector<16x1xf32>
    %30 = vector.broadcast %29 : vector<16x1xf32> to vector<16x32xf32>
    %31 = arith.mulf %21, %30 : vector<16x32xf32>
    %32 = vector.broadcast %14 : vector<1x32xf32> to vector<16x32xf32>
    %33 = arith.mulf %31, %32 : vector<16x32xf32>
    %34 = vector.broadcast %15 : vector<1x32xf32> to vector<16x32xf32>
    %35 = arith.addf %33, %34 : vector<16x32xf32>
    %c0_16 = arith.constant 0 : index
    %c0_17 = arith.constant 0 : index
    %36 = vector.load %arg1[%c0_16, %c0_17] : memref<2x8xf32, #tpu.memory_space<vmem>>, vector<2x8xf32>
    %cst_18 = arith.constant 1.000000e+00 : f32
    %37 = vector.broadcast %cst_18 : f32 to vector<2x8xf32>
    %38 = arith.subf %37, %36 : vector<2x8xf32>
    %cst_19 = arith.constant -1.000000e+04 : f32
    %39 = vector.broadcast %cst_19 : f32 to vector<2x8xf32>
    %40 = arith.mulf %38, %39 : vector<2x8xf32>
    %c0_20 = arith.constant 0 : index
    %c0_21 = arith.constant 0 : index
    %c0_22 = arith.constant 0 : index
    %41 = vector.load %arg7[%c0_20, %c0_21, %c0_22] : memref<4x32x16xf32, #tpu.memory_space<vmem>>, vector<1x32x16xf32>
    %42 = vector.shape_cast %41 : vector<1x32x16xf32> to vector<32x16xf32>
    %cst_23 = arith.constant dense<0.000000e+00> : vector<16x16xf32>
    %43 = tpu.matmul %35, %42, %cst_23 {dimension_numbers = #tpu.dot_dimension_numbers<[1], [0], [0], [1], [0, 0, 1, 1], [], []>} : vector<16x32xf32>, vector<32x16xf32>, vector<16x16xf32> -> vector<16x16xf32>
    %c0_24 = arith.constant 0 : index
    %c0_25 = arith.constant 0 : index
    %c0_26 = arith.constant 0 : index
    %44 = vector.load %arg8[%c0_24, %c0_25, %c0_26] : memref<4x1x16xf32, #tpu.memory_space<vmem>>, vector<1x1x16xf32>
    %45 = vector.shape_cast %44 : vector<1x1x16xf32> to vector<1x16xf32>
    %46 = vector.broadcast %45 : vector<1x16xf32> to vector<16x16xf32>
    %47 = arith.addf %43, %46 : vector<16x16xf32>
    %c0_27 = arith.constant 0 : index
    %c0_28 = arith.constant 0 : index
    %c0_29 = arith.constant 0 : index
    %48 = vector.load %arg9[%c0_27, %c0_28, %c0_29] : memref<4x32x16xf32, #tpu.memory_space<vmem>>, vector<1x32x16xf32>
    %49 = vector.shape_cast %48 : vector<1x32x16xf32> to vector<32x16xf32>
    %cst_30 = arith.constant dense<0.000000e+00> : vector<16x16xf32>
    %50 = tpu.matmul %35, %49, %cst_30 {dimension_numbers = #tpu.dot_dimension_numbers<[1], [0], [0], [1], [0, 0, 1, 1], [], []>} : vector<16x32xf32>, vector<32x16xf32>, vector<16x16xf32> -> vector<16x16xf32>
    %c0_31 = arith.constant 0 : index
    %c0_32 = arith.constant 0 : index
    %c0_33 = arith.constant 0 : index
    %51 = vector.load %arg10[%c0_31, %c0_32, %c0_33] : memref<4x1x16xf32, #tpu.memory_space<vmem>>, vector<1x1x16xf32>
    %52 = vector.shape_cast %51 : vector<1x1x16xf32> to vector<1x16xf32>
    %53 = vector.broadcast %52 : vector<1x16xf32> to vector<16x16xf32>
    %54 = arith.addf %50, %53 : vector<16x16xf32>
    %c0_34 = arith.constant 0 : index
    %c0_35 = arith.constant 0 : index
    %c0_36 = arith.constant 0 : index
    %55 = vector.load %arg11[%c0_34, %c0_35, %c0_36] : memref<4x32x16xf32, #tpu.memory_space<vmem>>, vector<1x32x16xf32>
    %56 = vector.shape_cast %55 : vector<1x32x16xf32> to vector<32x16xf32>
    %cst_37 = arith.constant dense<0.000000e+00> : vector<16x16xf32>
    %57 = tpu.matmul %35, %56, %cst_37 {dimension_numbers = #tpu.dot_dimension_numbers<[1], [0], [0], [1], [0, 0, 1, 1], [], []>} : vector<16x32xf32>, vector<32x16xf32>, vector<16x16xf32> -> vector<16x16xf32>
    %c0_38 = arith.constant 0 : index
    %c0_39 = arith.constant 0 : index
    %c0_40 = arith.constant 0 : index
    %58 = vector.load %arg12[%c0_38, %c0_39, %c0_40] : memref<4x1x16xf32, #tpu.memory_space<vmem>>, vector<1x1x16xf32>
    %59 = vector.shape_cast %58 : vector<1x1x16xf32> to vector<1x16xf32>
    %60 = vector.broadcast %59 : vector<1x16xf32> to vector<16x16xf32>
    %61 = arith.addf %57, %60 : vector<16x16xf32>
    %62 = vector.extract_strided_slice %47 {offsets = [0, 0], sizes = [8, 16], strides = [1, 1]} : vector<16x16xf32> to vector<8x16xf32>
    %63 = vector.extract_strided_slice %54 {offsets = [0, 0], sizes = [8, 16], strides = [1, 1]} : vector<16x16xf32> to vector<8x16xf32>
    %cst_41 = arith.constant dense<0.000000e+00> : vector<8x8xf32>
    %64 = tpu.matmul %62, %63, %cst_41 {dimension_numbers = #tpu.dot_dimension_numbers<[1], [1], [0], [0], [0, 0, 1, 0], [], []>} : vector<8x16xf32>, vector<8x16xf32>, vector<8x8xf32> -> vector<8x8xf32>
    %65 = vector.extract_strided_slice %40 {offsets = [0, 0], sizes = [1, 8], strides = [1, 1]} : vector<2x8xf32> to vector<1x8xf32>
    %66 = vector.broadcast %65 : vector<1x8xf32> to vector<8x8xf32>
    %67 = arith.addf %64, %66 : vector<8x8xf32>
    %cst_42 = arith.constant dense<0xFF800000> : vector<8xf32>
    %68 = vector.multi_reduction <maximumf>, %67, %cst_42 [1] : vector<8x8xf32> to vector<8xf32>
    %69 = vector.shape_cast %68 : vector<8xf32> to vector<8x1xf32>
    %70 = vector.broadcast %69 : vector<8x1xf32> to vector<8x8xf32>
    %71 = arith.subf %67, %70 : vector<8x8xf32>
    %72 = math.exp %71 : vector<8x8xf32>
    %cst_43 = arith.constant dense<0.000000e+00> : vector<8xf32>
    %73 = vector.multi_reduction <add>, %72, %cst_43 [1] : vector<8x8xf32> to vector<8xf32>
    %74 = vector.shape_cast %73 : vector<8xf32> to vector<8x1xf32>
    %75 = tpu.reciprocal %74 {approx = true} : vector<8x1xf32> -> vector<8x1xf32>
    %76 = vector.broadcast %75 : vector<8x1xf32> to vector<8x8xf32>
    %77 = arith.mulf %72, %76 : vector<8x8xf32>
    %78 = vector.extract_strided_slice %61 {offsets = [0, 0], sizes = [8, 16], strides = [1, 1]} : vector<16x16xf32> to vector<8x16xf32>
    %cst_44 = arith.constant dense<0.000000e+00> : vector<8x16xf32>
    %79 = tpu.matmul %77, %78, %cst_44 {dimension_numbers = #tpu.dot_dimension_numbers<[1], [0], [0], [1], [0, 0, 1, 1], [], []>} : vector<8x8xf32>, vector<8x16xf32>, vector<8x16xf32> -> vector<8x16xf32>
    %80 = vector.extract_strided_slice %47 {offsets = [8, 0], sizes = [8, 16], strides = [1, 1]} : vector<16x16xf32> to vector<8x16xf32>
    %81 = vector.extract_strided_slice %54 {offsets = [8, 0], sizes = [8, 16], strides = [1, 1]} : vector<16x16xf32> to vector<8x16xf32>
    %cst_45 = arith.constant dense<0.000000e+00> : vector<8x8xf32>
    %82 = tpu.matmul %80, %81, %cst_45 {dimension_numbers = #tpu.dot_dimension_numbers<[1], [1], [0], [0], [0, 0, 1, 0], [], []>} : vector<8x16xf32>, vector<8x16xf32>, vector<8x8xf32> -> vector<8x8xf32>
    %83 = vector.extract_strided_slice %40 {offsets = [1, 0], sizes = [1, 8], strides = [1, 1]} : vector<2x8xf32> to vector<1x8xf32>
    %84 = vector.broadcast %83 : vector<1x8xf32> to vector<8x8xf32>
    %85 = arith.addf %82, %84 : vector<8x8xf32>
    %cst_46 = arith.constant dense<0xFF800000> : vector<8xf32>
    %86 = vector.multi_reduction <maximumf>, %85, %cst_46 [1] : vector<8x8xf32> to vector<8xf32>
    %87 = vector.shape_cast %86 : vector<8xf32> to vector<8x1xf32>
    %88 = vector.broadcast %87 : vector<8x1xf32> to vector<8x8xf32>
    %89 = arith.subf %85, %88 : vector<8x8xf32>
    %90 = math.exp %89 : vector<8x8xf32>
    %cst_47 = arith.constant dense<0.000000e+00> : vector<8xf32>
    %91 = vector.multi_reduction <add>, %90, %cst_47 [1] : vector<8x8xf32> to vector<8xf32>
    %92 = vector.shape_cast %91 : vector<8xf32> to vector<8x1xf32>
    %93 = tpu.reciprocal %92 {approx = true} : vector<8x1xf32> -> vector<8x1xf32>
    %94 = vector.broadcast %93 : vector<8x1xf32> to vector<8x8xf32>
    %95 = arith.mulf %90, %94 : vector<8x8xf32>
    %96 = vector.extract_strided_slice %61 {offsets = [8, 0], sizes = [8, 16], strides = [1, 1]} : vector<16x16xf32> to vector<8x16xf32>
    %cst_48 = arith.constant dense<0.000000e+00> : vector<8x16xf32>
    %97 = tpu.matmul %95, %96, %cst_48 {dimension_numbers = #tpu.dot_dimension_numbers<[1], [0], [0], [1], [0, 0, 1, 1], [], []>} : vector<8x8xf32>, vector<8x16xf32>, vector<8x16xf32> -> vector<8x16xf32>
    %98 = tpu.concatenate %79, %97 in 0 : vector<8x16xf32>, vector<8x16xf32> -> vector<16x16xf32>
    %c0_49 = arith.constant 0 : index
    %c0_50 = arith.constant 0 : index
    %c0_51 = arith.constant 0 : index
    %99 = vector.load %arg13[%c0_49, %c0_50, %c0_51] : memref<4x16x32xf32, #tpu.memory_space<vmem>>, vector<1x16x32xf32>
    %100 = vector.shape_cast %99 : vector<1x16x32xf32> to vector<16x32xf32>
    %cst_52 = arith.constant dense<0.000000e+00> : vector<16x32xf32>
    %101 = tpu.matmul %98, %100, %cst_52 {dimension_numbers = #tpu.dot_dimension_numbers<[1], [0], [0], [1], [0, 0, 1, 1], [], []>} : vector<16x16xf32>, vector<16x32xf32>, vector<16x32xf32> -> vector<16x32xf32>
    %c1 = arith.constant 1 : index
    %c0_53 = arith.constant 0 : index
    %c0_54 = arith.constant 0 : index
    %102 = vector.load %arg7[%c1, %c0_53, %c0_54] : memref<4x32x16xf32, #tpu.memory_space<vmem>>, vector<1x32x16xf32>
    %103 = vector.shape_cast %102 : vector<1x32x16xf32> to vector<32x16xf32>
    %cst_55 = arith.constant dense<0.000000e+00> : vector<16x16xf32>
    %104 = tpu.matmul %35, %103, %cst_55 {dimension_numbers = #tpu.dot_dimension_numbers<[1], [0], [0], [1], [0, 0, 1, 1], [], []>} : vector<16x32xf32>, vector<32x16xf32>, vector<16x16xf32> -> vector<16x16xf32>
    %c1_56 = arith.constant 1 : index
    %c0_57 = arith.constant 0 : index
    %c0_58 = arith.constant 0 : index
    %105 = vector.load %arg8[%c1_56, %c0_57, %c0_58] : memref<4x1x16xf32, #tpu.memory_space<vmem>>, vector<1x1x16xf32>
    %106 = vector.shape_cast %105 : vector<1x1x16xf32> to vector<1x16xf32>
    %107 = vector.broadcast %106 : vector<1x16xf32> to vector<16x16xf32>
    %108 = arith.addf %104, %107 : vector<16x16xf32>
    %c1_59 = arith.constant 1 : index
    %c0_60 = arith.constant 0 : index
    %c0_61 = arith.constant 0 : index
    %109 = vector.load %arg9[%c1_59, %c0_60, %c0_61] : memref<4x32x16xf32, #tpu.memory_space<vmem>>, vector<1x32x16xf32>
    %110 = vector.shape_cast %109 : vector<1x32x16xf32> to vector<32x16xf32>
    %cst_62 = arith.constant dense<0.000000e+00> : vector<16x16xf32>
    %111 = tpu.matmul %35, %110, %cst_62 {dimension_numbers = #tpu.dot_dimension_numbers<[1], [0], [0], [1], [0, 0, 1, 1], [], []>} : vector<16x32xf32>, vector<32x16xf32>, vector<16x16xf32> -> vector<16x16xf32>
    %c1_63 = arith.constant 1 : index
    %c0_64 = arith.constant 0 : index
    %c0_65 = arith.constant 0 : index
    %112 = vector.load %arg10[%c1_63, %c0_64, %c0_65] : memref<4x1x16xf32, #tpu.memory_space<vmem>>, vector<1x1x16xf32>
    %113 = vector.shape_cast %112 : vector<1x1x16xf32> to vector<1x16xf32>
    %114 = vector.broadcast %113 : vector<1x16xf32> to vector<16x16xf32>
    %115 = arith.addf %111, %114 : vector<16x16xf32>
    %c1_66 = arith.constant 1 : index
    %c0_67 = arith.constant 0 : index
    %c0_68 = arith.constant 0 : index
    %116 = vector.load %arg11[%c1_66, %c0_67, %c0_68] : memref<4x32x16xf32, #tpu.memory_space<vmem>>, vector<1x32x16xf32>
    %117 = vector.shape_cast %116 : vector<1x32x16xf32> to vector<32x16xf32>
    %cst_69 = arith.constant dense<0.000000e+00> : vector<16x16xf32>
    %118 = tpu.matmul %35, %117, %cst_69 {dimension_numbers = #tpu.dot_dimension_numbers<[1], [0], [0], [1], [0, 0, 1, 1], [], []>} : vector<16x32xf32>, vector<32x16xf32>, vector<16x16xf32> -> vector<16x16xf32>
    %c1_70 = arith.constant 1 : index
    %c0_71 = arith.constant 0 : index
    %c0_72 = arith.constant 0 : index
    %119 = vector.load %arg12[%c1_70, %c0_71, %c0_72] : memref<4x1x16xf32, #tpu.memory_space<vmem>>, vector<1x1x16xf32>
    %120 = vector.shape_cast %119 : vector<1x1x16xf32> to vector<1x16xf32>
    %121 = vector.broadcast %120 : vector<1x16xf32> to vector<16x16xf32>
    %122 = arith.addf %118, %121 : vector<16x16xf32>
    %123 = vector.extract_strided_slice %108 {offsets = [0, 0], sizes = [8, 16], strides = [1, 1]} : vector<16x16xf32> to vector<8x16xf32>
    %124 = vector.extract_strided_slice %115 {offsets = [0, 0], sizes = [8, 16], strides = [1, 1]} : vector<16x16xf32> to vector<8x16xf32>
    %cst_73 = arith.constant dense<0.000000e+00> : vector<8x8xf32>
    %125 = tpu.matmul %123, %124, %cst_73 {dimension_numbers = #tpu.dot_dimension_numbers<[1], [1], [0], [0], [0, 0, 1, 0], [], []>} : vector<8x16xf32>, vector<8x16xf32>, vector<8x8xf32> -> vector<8x8xf32>
    %126 = vector.extract_strided_slice %40 {offsets = [0, 0], sizes = [1, 8], strides = [1, 1]} : vector<2x8xf32> to vector<1x8xf32>
    %127 = vector.broadcast %126 : vector<1x8xf32> to vector<8x8xf32>
    %128 = arith.addf %125, %127 : vector<8x8xf32>
    %cst_74 = arith.constant dense<0xFF800000> : vector<8xf32>
    %129 = vector.multi_reduction <maximumf>, %128, %cst_74 [1] : vector<8x8xf32> to vector<8xf32>
    %130 = vector.shape_cast %129 : vector<8xf32> to vector<8x1xf32>
    %131 = vector.broadcast %130 : vector<8x1xf32> to vector<8x8xf32>
    %132 = arith.subf %128, %131 : vector<8x8xf32>
    %133 = math.exp %132 : vector<8x8xf32>
    %cst_75 = arith.constant dense<0.000000e+00> : vector<8xf32>
    %134 = vector.multi_reduction <add>, %133, %cst_75 [1] : vector<8x8xf32> to vector<8xf32>
    %135 = vector.shape_cast %134 : vector<8xf32> to vector<8x1xf32>
    %136 = tpu.reciprocal %135 {approx = true} : vector<8x1xf32> -> vector<8x1xf32>
    %137 = vector.broadcast %136 : vector<8x1xf32> to vector<8x8xf32>
    %138 = arith.mulf %133, %137 : vector<8x8xf32>
    %139 = vector.extract_strided_slice %122 {offsets = [0, 0], sizes = [8, 16], strides = [1, 1]} : vector<16x16xf32> to vector<8x16xf32>
    %cst_76 = arith.constant dense<0.000000e+00> : vector<8x16xf32>
    %140 = tpu.matmul %138, %139, %cst_76 {dimension_numbers = #tpu.dot_dimension_numbers<[1], [0], [0], [1], [0, 0, 1, 1], [], []>} : vector<8x8xf32>, vector<8x16xf32>, vector<8x16xf32> -> vector<8x16xf32>
    %141 = vector.extract_strided_slice %108 {offsets = [8, 0], sizes = [8, 16], strides = [1, 1]} : vector<16x16xf32> to vector<8x16xf32>
    %142 = vector.extract_strided_slice %115 {offsets = [8, 0], sizes = [8, 16], strides = [1, 1]} : vector<16x16xf32> to vector<8x16xf32>
    %cst_77 = arith.constant dense<0.000000e+00> : vector<8x8xf32>
    %143 = tpu.matmul %141, %142, %cst_77 {dimension_numbers = #tpu.dot_dimension_numbers<[1], [1], [0], [0], [0, 0, 1, 0], [], []>} : vector<8x16xf32>, vector<8x16xf32>, vector<8x8xf32> -> vector<8x8xf32>
    %144 = vector.extract_strided_slice %40 {offsets = [1, 0], sizes = [1, 8], strides = [1, 1]} : vector<2x8xf32> to vector<1x8xf32>
    %145 = vector.broadcast %144 : vector<1x8xf32> to vector<8x8xf32>
    %146 = arith.addf %143, %145 : vector<8x8xf32>
    %cst_78 = arith.constant dense<0xFF800000> : vector<8xf32>
    %147 = vector.multi_reduction <maximumf>, %146, %cst_78 [1] : vector<8x8xf32> to vector<8xf32>
    %148 = vector.shape_cast %147 : vector<8xf32> to vector<8x1xf32>
    %149 = vector.broadcast %148 : vector<8x1xf32> to vector<8x8xf32>
    %150 = arith.subf %146, %149 : vector<8x8xf32>
    %151 = math.exp %150 : vector<8x8xf32>
    %cst_79 = arith.constant dense<0.000000e+00> : vector<8xf32>
    %152 = vector.multi_reduction <add>, %151, %cst_79 [1] : vector<8x8xf32> to vector<8xf32>
    %153 = vector.shape_cast %152 : vector<8xf32> to vector<8x1xf32>
    %154 = tpu.reciprocal %153 {approx = true} : vector<8x1xf32> -> vector<8x1xf32>
    %155 = vector.broadcast %154 : vector<8x1xf32> to vector<8x8xf32>
    %156 = arith.mulf %151, %155 : vector<8x8xf32>
    %157 = vector.extract_strided_slice %122 {offsets = [8, 0], sizes = [8, 16], strides = [1, 1]} : vector<16x16xf32> to vector<8x16xf32>
    %cst_80 = arith.constant dense<0.000000e+00> : vector<8x16xf32>
    %158 = tpu.matmul %156, %157, %cst_80 {dimension_numbers = #tpu.dot_dimension_numbers<[1], [0], [0], [1], [0, 0, 1, 1], [], []>} : vector<8x8xf32>, vector<8x16xf32>, vector<8x16xf32> -> vector<8x16xf32>
    %159 = tpu.concatenate %140, %158 in 0 : vector<8x16xf32>, vector<8x16xf32> -> vector<16x16xf32>
    %c1_81 = arith.constant 1 : index
    %c0_82 = arith.constant 0 : index
    %c0_83 = arith.constant 0 : index
    %160 = vector.load %arg13[%c1_81, %c0_82, %c0_83] : memref<4x16x32xf32, #tpu.memory_space<vmem>>, vector<1x16x32xf32>
    %161 = vector.shape_cast %160 : vector<1x16x32xf32> to vector<16x32xf32>
    %cst_84 = arith.constant dense<0.000000e+00> : vector<16x32xf32>
    %162 = tpu.matmul %159, %161, %cst_84 {dimension_numbers = #tpu.dot_dimension_numbers<[1], [0], [0], [1], [0, 0, 1, 1], [], []>} : vector<16x16xf32>, vector<16x32xf32>, vector<16x32xf32> -> vector<16x32xf32>
    %163 = arith.addf %101, %162 : vector<16x32xf32>
    %c0_85 = arith.constant 0 : index
    %c0_86 = arith.constant 0 : index
    %c0_87 = arith.constant 0 : index
    %164 = vector.load %arg14[%c0_85, %c0_86, %c0_87] : memref<2x1x32xf32, #tpu.memory_space<vmem>>, vector<1x1x32xf32>
    %165 = vector.shape_cast %164 : vector<1x1x32xf32> to vector<1x32xf32>
    %166 = vector.broadcast %165 : vector<1x32xf32> to vector<16x32xf32>
    %167 = arith.addf %163, %166 : vector<16x32xf32>
    %168 = arith.addf %35, %167 : vector<16x32xf32>
    %c0_88 = arith.constant 0 : index
    %c0_89 = arith.constant 0 : index
    %c0_90 = arith.constant 0 : index
    %169 = vector.load %arg15[%c0_88, %c0_89, %c0_90] : memref<2x1x32xf32, #tpu.memory_space<vmem>>, vector<1x1x32xf32>
    %170 = vector.shape_cast %169 : vector<1x1x32xf32> to vector<1x32xf32>
    %c0_91 = arith.constant 0 : index
    %c0_92 = arith.constant 0 : index
    %c0_93 = arith.constant 0 : index
    %171 = vector.load %arg16[%c0_91, %c0_92, %c0_93] : memref<2x1x32xf32, #tpu.memory_space<vmem>>, vector<1x1x32xf32>
    %172 = vector.shape_cast %171 : vector<1x1x32xf32> to vector<1x32xf32>
    %cst_94 = arith.constant dense<0.000000e+00> : vector<16xf32>
    %173 = vector.multi_reduction <add>, %168, %cst_94 [1] : vector<16x32xf32> to vector<16xf32>
    %174 = vector.shape_cast %173 : vector<16xf32> to vector<16x1xf32>
    %cst_95 = arith.constant 3.200000e+01 : f32
    %175 = vector.broadcast %cst_95 : f32 to vector<16x1xf32>
    %176 = arith.divf %174, %175 : vector<16x1xf32>
    %177 = vector.broadcast %176 : vector<16x1xf32> to vector<16x32xf32>
    %178 = arith.subf %168, %177 : vector<16x32xf32>
    %179 = arith.mulf %178, %178 : vector<16x32xf32>
    %cst_96 = arith.constant dense<0.000000e+00> : vector<16xf32>
    %180 = vector.multi_reduction <add>, %179, %cst_96 [1] : vector<16x32xf32> to vector<16xf32>
    %181 = vector.shape_cast %180 : vector<16xf32> to vector<16x1xf32>
    %cst_97 = arith.constant 3.200000e+01 : f32
    %182 = vector.broadcast %cst_97 : f32 to vector<16x1xf32>
    %183 = arith.divf %181, %182 : vector<16x1xf32>
    %cst_98 = arith.constant 9.99999996E-13 : f32
    %184 = vector.broadcast %cst_98 : f32 to vector<16x1xf32>
    %185 = arith.addf %183, %184 : vector<16x1xf32>
    %186 = math.rsqrt %185 : vector<16x1xf32>
    %187 = vector.broadcast %186 : vector<16x1xf32> to vector<16x32xf32>
    %188 = arith.mulf %178, %187 : vector<16x32xf32>
    %189 = vector.broadcast %170 : vector<1x32xf32> to vector<16x32xf32>
    %190 = arith.mulf %188, %189 : vector<16x32xf32>
    %191 = vector.broadcast %172 : vector<1x32xf32> to vector<16x32xf32>
    %192 = arith.addf %190, %191 : vector<16x32xf32>
    %c0_99 = arith.constant 0 : index
    %c0_100 = arith.constant 0 : index
    %c0_101 = arith.constant 0 : index
    %193 = vector.load %arg17[%c0_99, %c0_100, %c0_101] : memref<2x32x64xf32, #tpu.memory_space<vmem>>, vector<1x32x64xf32>
    %194 = vector.shape_cast %193 : vector<1x32x64xf32> to vector<32x64xf32>
    %cst_102 = arith.constant dense<0.000000e+00> : vector<16x64xf32>
    %195 = tpu.matmul %192, %194, %cst_102 {dimension_numbers = #tpu.dot_dimension_numbers<[1], [0], [0], [1], [0, 0, 1, 1], [], []>} : vector<16x32xf32>, vector<32x64xf32>, vector<16x64xf32> -> vector<16x64xf32>
    %c0_103 = arith.constant 0 : index
    %c0_104 = arith.constant 0 : index
    %c0_105 = arith.constant 0 : index
    %196 = vector.load %arg18[%c0_103, %c0_104, %c0_105] : memref<2x1x64xf32, #tpu.memory_space<vmem>>, vector<1x1x64xf32>
    %197 = vector.shape_cast %196 : vector<1x1x64xf32> to vector<1x64xf32>
    %198 = vector.broadcast %197 : vector<1x64xf32> to vector<16x64xf32>
    %199 = arith.addf %195, %198 : vector<16x64xf32>
    %cst_106 = arith.constant 5.000000e-01 : f32
    %200 = vector.broadcast %cst_106 : f32 to vector<16x64xf32>
    %201 = arith.mulf %200, %199 : vector<16x64xf32>
    %cst_107 = arith.constant 4.471500e-02 : f32
    %202 = vector.broadcast %cst_107 : f32 to vector<16x64xf32>
    %203 = arith.mulf %202, %199 : vector<16x64xf32>
    %204 = arith.mulf %203, %199 : vector<16x64xf32>
    %205 = arith.mulf %204, %199 : vector<16x64xf32>
    %206 = arith.addf %199, %205 : vector<16x64xf32>
    %cst_108 = arith.constant 0.797884583 : f32
    %207 = vector.broadcast %cst_108 : f32 to vector<16x64xf32>
    %208 = arith.mulf %207, %206 : vector<16x64xf32>
    %209 = math.tanh %208 : vector<16x64xf32>
    %cst_109 = arith.constant 1.000000e+00 : f32
    %210 = vector.broadcast %cst_109 : f32 to vector<16x64xf32>
    %211 = arith.addf %210, %209 : vector<16x64xf32>
    %212 = arith.mulf %201, %211 : vector<16x64xf32>
    %c0_110 = arith.constant 0 : index
    %c0_111 = arith.constant 0 : index
    %c0_112 = arith.constant 0 : index
    %213 = vector.load %arg19[%c0_110, %c0_111, %c0_112] : memref<2x64x32xf32, #tpu.memory_space<vmem>>, vector<1x64x32xf32>
    %214 = vector.shape_cast %213 : vector<1x64x32xf32> to vector<64x32xf32>
    %cst_113 = arith.constant dense<0.000000e+00> : vector<16x32xf32>
    %215 = tpu.matmul %212, %214, %cst_113 {dimension_numbers = #tpu.dot_dimension_numbers<[1], [0], [0], [1], [0, 0, 1, 1], [], []>} : vector<16x64xf32>, vector<64x32xf32>, vector<16x32xf32> -> vector<16x32xf32>
    %c0_114 = arith.constant 0 : index
    %c0_115 = arith.constant 0 : index
    %c0_116 = arith.constant 0 : index
    %216 = vector.load %arg20[%c0_114, %c0_115, %c0_116] : memref<2x1x32xf32, #tpu.memory_space<vmem>>, vector<1x1x32xf32>
    %217 = vector.shape_cast %216 : vector<1x1x32xf32> to vector<1x32xf32>
    %218 = vector.broadcast %217 : vector<1x32xf32> to vector<16x32xf32>
    %219 = arith.addf %215, %218 : vector<16x32xf32>
    %220 = arith.addf %192, %219 : vector<16x32xf32>
    %c0_117 = arith.constant 0 : index
    %c0_118 = arith.constant 0 : index
    %c0_119 = arith.constant 0 : index
    %221 = vector.load %arg21[%c0_117, %c0_118, %c0_119] : memref<2x1x32xf32, #tpu.memory_space<vmem>>, vector<1x1x32xf32>
    %222 = vector.shape_cast %221 : vector<1x1x32xf32> to vector<1x32xf32>
    %c0_120 = arith.constant 0 : index
    %c0_121 = arith.constant 0 : index
    %c0_122 = arith.constant 0 : index
    %223 = vector.load %arg22[%c0_120, %c0_121, %c0_122] : memref<2x1x32xf32, #tpu.memory_space<vmem>>, vector<1x1x32xf32>
    %224 = vector.shape_cast %223 : vector<1x1x32xf32> to vector<1x32xf32>
    %cst_123 = arith.constant dense<0.000000e+00> : vector<16xf32>
    %225 = vector.multi_reduction <add>, %220, %cst_123 [1] : vector<16x32xf32> to vector<16xf32>
    %226 = vector.shape_cast %225 : vector<16xf32> to vector<16x1xf32>
    %cst_124 = arith.constant 3.200000e+01 : f32
    %227 = vector.broadcast %cst_124 : f32 to vector<16x1xf32>
    %228 = arith.divf %226, %227 : vector<16x1xf32>
    %229 = vector.broadcast %228 : vector<16x1xf32> to vector<16x32xf32>
    %230 = arith.subf %220, %229 : vector<16x32xf32>
    %231 = arith.mulf %230, %230 : vector<16x32xf32>
    %cst_125 = arith.constant dense<0.000000e+00> : vector<16xf32>
    %232 = vector.multi_reduction <add>, %231, %cst_125 [1] : vector<16x32xf32> to vector<16xf32>
    %233 = vector.shape_cast %232 : vector<16xf32> to vector<16x1xf32>
    %cst_126 = arith.constant 3.200000e+01 : f32
    %234 = vector.broadcast %cst_126 : f32 to vector<16x1xf32>
    %235 = arith.divf %233, %234 : vector<16x1xf32>
    %cst_127 = arith.constant 9.99999996E-13 : f32
    %236 = vector.broadcast %cst_127 : f32 to vector<16x1xf32>
    %237 = arith.addf %235, %236 : vector<16x1xf32>
    %238 = math.rsqrt %237 : vector<16x1xf32>
    %239 = vector.broadcast %238 : vector<16x1xf32> to vector<16x32xf32>
    %240 = arith.mulf %230, %239 : vector<16x32xf32>
    %241 = vector.broadcast %222 : vector<1x32xf32> to vector<16x32xf32>
    %242 = arith.mulf %240, %241 : vector<16x32xf32>
    %243 = vector.broadcast %224 : vector<1x32xf32> to vector<16x32xf32>
    %244 = arith.addf %242, %243 : vector<16x32xf32>
    %c2 = arith.constant 2 : index
    %c0_128 = arith.constant 0 : index
    %c0_129 = arith.constant 0 : index
    %245 = vector.load %arg7[%c2, %c0_128, %c0_129] : memref<4x32x16xf32, #tpu.memory_space<vmem>>, vector<1x32x16xf32>
    %246 = vector.shape_cast %245 : vector<1x32x16xf32> to vector<32x16xf32>
    %cst_130 = arith.constant dense<0.000000e+00> : vector<16x16xf32>
    %247 = tpu.matmul %244, %246, %cst_130 {dimension_numbers = #tpu.dot_dimension_numbers<[1], [0], [0], [1], [0, 0, 1, 1], [], []>} : vector<16x32xf32>, vector<32x16xf32>, vector<16x16xf32> -> vector<16x16xf32>
    %c2_131 = arith.constant 2 : index
    %c0_132 = arith.constant 0 : index
    %c0_133 = arith.constant 0 : index
    %248 = vector.load %arg8[%c2_131, %c0_132, %c0_133] : memref<4x1x16xf32, #tpu.memory_space<vmem>>, vector<1x1x16xf32>
    %249 = vector.shape_cast %248 : vector<1x1x16xf32> to vector<1x16xf32>
    %250 = vector.broadcast %249 : vector<1x16xf32> to vector<16x16xf32>
    %251 = arith.addf %247, %250 : vector<16x16xf32>
    %c2_134 = arith.constant 2 : index
    %c0_135 = arith.constant 0 : index
    %c0_136 = arith.constant 0 : index
    %252 = vector.load %arg9[%c2_134, %c0_135, %c0_136] : memref<4x32x16xf32, #tpu.memory_space<vmem>>, vector<1x32x16xf32>
    %253 = vector.shape_cast %252 : vector<1x32x16xf32> to vector<32x16xf32>
    %cst_137 = arith.constant dense<0.000000e+00> : vector<16x16xf32>
    %254 = tpu.matmul %244, %253, %cst_137 {dimension_numbers = #tpu.dot_dimension_numbers<[1], [0], [0], [1], [0, 0, 1, 1], [], []>} : vector<16x32xf32>, vector<32x16xf32>, vector<16x16xf32> -> vector<16x16xf32>
    %c2_138 = arith.constant 2 : index
    %c0_139 = arith.constant 0 : index
    %c0_140 = arith.constant 0 : index
    %255 = vector.load %arg10[%c2_138, %c0_139, %c0_140] : memref<4x1x16xf32, #tpu.memory_space<vmem>>, vector<1x1x16xf32>
    %256 = vector.shape_cast %255 : vector<1x1x16xf32> to vector<1x16xf32>
    %257 = vector.broadcast %256 : vector<1x16xf32> to vector<16x16xf32>
    %258 = arith.addf %254, %257 : vector<16x16xf32>
    %c2_141 = arith.constant 2 : index
    %c0_142 = arith.constant 0 : index
    %c0_143 = arith.constant 0 : index
    %259 = vector.load %arg11[%c2_141, %c0_142, %c0_143] : memref<4x32x16xf32, #tpu.memory_space<vmem>>, vector<1x32x16xf32>
    %260 = vector.shape_cast %259 : vector<1x32x16xf32> to vector<32x16xf32>
    %cst_144 = arith.constant dense<0.000000e+00> : vector<16x16xf32>
    %261 = tpu.matmul %244, %260, %cst_144 {dimension_numbers = #tpu.dot_dimension_numbers<[1], [0], [0], [1], [0, 0, 1, 1], [], []>} : vector<16x32xf32>, vector<32x16xf32>, vector<16x16xf32> -> vector<16x16xf32>
    %c2_145 = arith.constant 2 : index
    %c0_146 = arith.constant 0 : index
    %c0_147 = arith.constant 0 : index
    %262 = vector.load %arg12[%c2_145, %c0_146, %c0_147] : memref<4x1x16xf32, #tpu.memory_space<vmem>>, vector<1x1x16xf32>
    %263 = vector.shape_cast %262 : vector<1x1x16xf32> to vector<1x16xf32>
    %264 = vector.broadcast %263 : vector<1x16xf32> to vector<16x16xf32>
    %265 = arith.addf %261, %264 : vector<16x16xf32>
    %266 = vector.extract_strided_slice %251 {offsets = [0, 0], sizes = [8, 16], strides = [1, 1]} : vector<16x16xf32> to vector<8x16xf32>
    %267 = vector.extract_strided_slice %258 {offsets = [0, 0], sizes = [8, 16], strides = [1, 1]} : vector<16x16xf32> to vector<8x16xf32>
    %cst_148 = arith.constant dense<0.000000e+00> : vector<8x8xf32>
    %268 = tpu.matmul %266, %267, %cst_148 {dimension_numbers = #tpu.dot_dimension_numbers<[1], [1], [0], [0], [0, 0, 1, 0], [], []>} : vector<8x16xf32>, vector<8x16xf32>, vector<8x8xf32> -> vector<8x8xf32>
    %269 = vector.extract_strided_slice %40 {offsets = [0, 0], sizes = [1, 8], strides = [1, 1]} : vector<2x8xf32> to vector<1x8xf32>
    %270 = vector.broadcast %269 : vector<1x8xf32> to vector<8x8xf32>
    %271 = arith.addf %268, %270 : vector<8x8xf32>
    %cst_149 = arith.constant dense<0xFF800000> : vector<8xf32>
    %272 = vector.multi_reduction <maximumf>, %271, %cst_149 [1] : vector<8x8xf32> to vector<8xf32>
    %273 = vector.shape_cast %272 : vector<8xf32> to vector<8x1xf32>
    %274 = vector.broadcast %273 : vector<8x1xf32> to vector<8x8xf32>
    %275 = arith.subf %271, %274 : vector<8x8xf32>
    %276 = math.exp %275 : vector<8x8xf32>
    %cst_150 = arith.constant dense<0.000000e+00> : vector<8xf32>
    %277 = vector.multi_reduction <add>, %276, %cst_150 [1] : vector<8x8xf32> to vector<8xf32>
    %278 = vector.shape_cast %277 : vector<8xf32> to vector<8x1xf32>
    %279 = tpu.reciprocal %278 {approx = true} : vector<8x1xf32> -> vector<8x1xf32>
    %280 = vector.broadcast %279 : vector<8x1xf32> to vector<8x8xf32>
    %281 = arith.mulf %276, %280 : vector<8x8xf32>
    %282 = vector.extract_strided_slice %265 {offsets = [0, 0], sizes = [8, 16], strides = [1, 1]} : vector<16x16xf32> to vector<8x16xf32>
    %cst_151 = arith.constant dense<0.000000e+00> : vector<8x16xf32>
    %283 = tpu.matmul %281, %282, %cst_151 {dimension_numbers = #tpu.dot_dimension_numbers<[1], [0], [0], [1], [0, 0, 1, 1], [], []>} : vector<8x8xf32>, vector<8x16xf32>, vector<8x16xf32> -> vector<8x16xf32>
    %284 = vector.extract_strided_slice %251 {offsets = [8, 0], sizes = [8, 16], strides = [1, 1]} : vector<16x16xf32> to vector<8x16xf32>
    %285 = vector.extract_strided_slice %258 {offsets = [8, 0], sizes = [8, 16], strides = [1, 1]} : vector<16x16xf32> to vector<8x16xf32>
    %cst_152 = arith.constant dense<0.000000e+00> : vector<8x8xf32>
    %286 = tpu.matmul %284, %285, %cst_152 {dimension_numbers = #tpu.dot_dimension_numbers<[1], [1], [0], [0], [0, 0, 1, 0], [], []>} : vector<8x16xf32>, vector<8x16xf32>, vector<8x8xf32> -> vector<8x8xf32>
    %287 = vector.extract_strided_slice %40 {offsets = [1, 0], sizes = [1, 8], strides = [1, 1]} : vector<2x8xf32> to vector<1x8xf32>
    %288 = vector.broadcast %287 : vector<1x8xf32> to vector<8x8xf32>
    %289 = arith.addf %286, %288 : vector<8x8xf32>
    %cst_153 = arith.constant dense<0xFF800000> : vector<8xf32>
    %290 = vector.multi_reduction <maximumf>, %289, %cst_153 [1] : vector<8x8xf32> to vector<8xf32>
    %291 = vector.shape_cast %290 : vector<8xf32> to vector<8x1xf32>
    %292 = vector.broadcast %291 : vector<8x1xf32> to vector<8x8xf32>
    %293 = arith.subf %289, %292 : vector<8x8xf32>
    %294 = math.exp %293 : vector<8x8xf32>
    %cst_154 = arith.constant dense<0.000000e+00> : vector<8xf32>
    %295 = vector.multi_reduction <add>, %294, %cst_154 [1] : vector<8x8xf32> to vector<8xf32>
    %296 = vector.shape_cast %295 : vector<8xf32> to vector<8x1xf32>
    %297 = tpu.reciprocal %296 {approx = true} : vector<8x1xf32> -> vector<8x1xf32>
    %298 = vector.broadcast %297 : vector<8x1xf32> to vector<8x8xf32>
    %299 = arith.mulf %294, %298 : vector<8x8xf32>
    %300 = vector.extract_strided_slice %265 {offsets = [8, 0], sizes = [8, 16], strides = [1, 1]} : vector<16x16xf32> to vector<8x16xf32>
    %cst_155 = arith.constant dense<0.000000e+00> : vector<8x16xf32>
    %301 = tpu.matmul %299, %300, %cst_155 {dimension_numbers = #tpu.dot_dimension_numbers<[1], [0], [0], [1], [0, 0, 1, 1], [], []>} : vector<8x8xf32>, vector<8x16xf32>, vector<8x16xf32> -> vector<8x16xf32>
    %302 = tpu.concatenate %283, %301 in 0 : vector<8x16xf32>, vector<8x16xf32> -> vector<16x16xf32>
    %c2_156 = arith.constant 2 : index
    %c0_157 = arith.constant 0 : index
    %c0_158 = arith.constant 0 : index
    %303 = vector.load %arg13[%c2_156, %c0_157, %c0_158] : memref<4x16x32xf32, #tpu.memory_space<vmem>>, vector<1x16x32xf32>
    %304 = vector.shape_cast %303 : vector<1x16x32xf32> to vector<16x32xf32>
    %cst_159 = arith.constant dense<0.000000e+00> : vector<16x32xf32>
    %305 = tpu.matmul %302, %304, %cst_159 {dimension_numbers = #tpu.dot_dimension_numbers<[1], [0], [0], [1], [0, 0, 1, 1], [], []>} : vector<16x16xf32>, vector<16x32xf32>, vector<16x32xf32> -> vector<16x32xf32>
    %c3 = arith.constant 3 : index
    %c0_160 = arith.constant 0 : index
    %c0_161 = arith.constant 0 : index
    %306 = vector.load %arg7[%c3, %c0_160, %c0_161] : memref<4x32x16xf32, #tpu.memory_space<vmem>>, vector<1x32x16xf32>
    %307 = vector.shape_cast %306 : vector<1x32x16xf32> to vector<32x16xf32>
    %cst_162 = arith.constant dense<0.000000e+00> : vector<16x16xf32>
    %308 = tpu.matmul %244, %307, %cst_162 {dimension_numbers = #tpu.dot_dimension_numbers<[1], [0], [0], [1], [0, 0, 1, 1], [], []>} : vector<16x32xf32>, vector<32x16xf32>, vector<16x16xf32> -> vector<16x16xf32>
    %c3_163 = arith.constant 3 : index
    %c0_164 = arith.constant 0 : index
    %c0_165 = arith.constant 0 : index
    %309 = vector.load %arg8[%c3_163, %c0_164, %c0_165] : memref<4x1x16xf32, #tpu.memory_space<vmem>>, vector<1x1x16xf32>
    %310 = vector.shape_cast %309 : vector<1x1x16xf32> to vector<1x16xf32>
    %311 = vector.broadcast %310 : vector<1x16xf32> to vector<16x16xf32>
    %312 = arith.addf %308, %311 : vector<16x16xf32>
    %c3_166 = arith.constant 3 : index
    %c0_167 = arith.constant 0 : index
    %c0_168 = arith.constant 0 : index
    %313 = vector.load %arg9[%c3_166, %c0_167, %c0_168] : memref<4x32x16xf32, #tpu.memory_space<vmem>>, vector<1x32x16xf32>
    %314 = vector.shape_cast %313 : vector<1x32x16xf32> to vector<32x16xf32>
    %cst_169 = arith.constant dense<0.000000e+00> : vector<16x16xf32>
    %315 = tpu.matmul %244, %314, %cst_169 {dimension_numbers = #tpu.dot_dimension_numbers<[1], [0], [0], [1], [0, 0, 1, 1], [], []>} : vector<16x32xf32>, vector<32x16xf32>, vector<16x16xf32> -> vector<16x16xf32>
    %c3_170 = arith.constant 3 : index
    %c0_171 = arith.constant 0 : index
    %c0_172 = arith.constant 0 : index
    %316 = vector.load %arg10[%c3_170, %c0_171, %c0_172] : memref<4x1x16xf32, #tpu.memory_space<vmem>>, vector<1x1x16xf32>
    %317 = vector.shape_cast %316 : vector<1x1x16xf32> to vector<1x16xf32>
    %318 = vector.broadcast %317 : vector<1x16xf32> to vector<16x16xf32>
    %319 = arith.addf %315, %318 : vector<16x16xf32>
    %c3_173 = arith.constant 3 : index
    %c0_174 = arith.constant 0 : index
    %c0_175 = arith.constant 0 : index
    %320 = vector.load %arg11[%c3_173, %c0_174, %c0_175] : memref<4x32x16xf32, #tpu.memory_space<vmem>>, vector<1x32x16xf32>
    %321 = vector.shape_cast %320 : vector<1x32x16xf32> to vector<32x16xf32>
    %cst_176 = arith.constant dense<0.000000e+00> : vector<16x16xf32>
    %322 = tpu.matmul %244, %321, %cst_176 {dimension_numbers = #tpu.dot_dimension_numbers<[1], [0], [0], [1], [0, 0, 1, 1], [], []>} : vector<16x32xf32>, vector<32x16xf32>, vector<16x16xf32> -> vector<16x16xf32>
    %c3_177 = arith.constant 3 : index
    %c0_178 = arith.constant 0 : index
    %c0_179 = arith.constant 0 : index
    %323 = vector.load %arg12[%c3_177, %c0_178, %c0_179] : memref<4x1x16xf32, #tpu.memory_space<vmem>>, vector<1x1x16xf32>
    %324 = vector.shape_cast %323 : vector<1x1x16xf32> to vector<1x16xf32>
    %325 = vector.broadcast %324 : vector<1x16xf32> to vector<16x16xf32>
    %326 = arith.addf %322, %325 : vector<16x16xf32>
    %327 = vector.extract_strided_slice %312 {offsets = [0, 0], sizes = [8, 16], strides = [1, 1]} : vector<16x16xf32> to vector<8x16xf32>
    %328 = vector.extract_strided_slice %319 {offsets = [0, 0], sizes = [8, 16], strides = [1, 1]} : vector<16x16xf32> to vector<8x16xf32>
    %cst_180 = arith.constant dense<0.000000e+00> : vector<8x8xf32>
    %329 = tpu.matmul %327, %328, %cst_180 {dimension_numbers = #tpu.dot_dimension_numbers<[1], [1], [0], [0], [0, 0, 1, 0], [], []>} : vector<8x16xf32>, vector<8x16xf32>, vector<8x8xf32> -> vector<8x8xf32>
    %330 = vector.extract_strided_slice %40 {offsets = [0, 0], sizes = [1, 8], strides = [1, 1]} : vector<2x8xf32> to vector<1x8xf32>
    %331 = vector.broadcast %330 : vector<1x8xf32> to vector<8x8xf32>
    %332 = arith.addf %329, %331 : vector<8x8xf32>
    %cst_181 = arith.constant dense<0xFF800000> : vector<8xf32>
    %333 = vector.multi_reduction <maximumf>, %332, %cst_181 [1] : vector<8x8xf32> to vector<8xf32>
    %334 = vector.shape_cast %333 : vector<8xf32> to vector<8x1xf32>
    %335 = vector.broadcast %334 : vector<8x1xf32> to vector<8x8xf32>
    %336 = arith.subf %332, %335 : vector<8x8xf32>
    %337 = math.exp %336 : vector<8x8xf32>
    %cst_182 = arith.constant dense<0.000000e+00> : vector<8xf32>
    %338 = vector.multi_reduction <add>, %337, %cst_182 [1] : vector<8x8xf32> to vector<8xf32>
    %339 = vector.shape_cast %338 : vector<8xf32> to vector<8x1xf32>
    %340 = tpu.reciprocal %339 {approx = true} : vector<8x1xf32> -> vector<8x1xf32>
    %341 = vector.broadcast %340 : vector<8x1xf32> to vector<8x8xf32>
    %342 = arith.mulf %337, %341 : vector<8x8xf32>
    %343 = vector.extract_strided_slice %326 {offsets = [0, 0], sizes = [8, 16], strides = [1, 1]} : vector<16x16xf32> to vector<8x16xf32>
    %cst_183 = arith.constant dense<0.000000e+00> : vector<8x16xf32>
    %344 = tpu.matmul %342, %343, %cst_183 {dimension_numbers = #tpu.dot_dimension_numbers<[1], [0], [0], [1], [0, 0, 1, 1], [], []>} : vector<8x8xf32>, vector<8x16xf32>, vector<8x16xf32> -> vector<8x16xf32>
    %345 = vector.extract_strided_slice %312 {offsets = [8, 0], sizes = [8, 16], strides = [1, 1]} : vector<16x16xf32> to vector<8x16xf32>
    %346 = vector.extract_strided_slice %319 {offsets = [8, 0], sizes = [8, 16], strides = [1, 1]} : vector<16x16xf32> to vector<8x16xf32>
    %cst_184 = arith.constant dense<0.000000e+00> : vector<8x8xf32>
    %347 = tpu.matmul %345, %346, %cst_184 {dimension_numbers = #tpu.dot_dimension_numbers<[1], [1], [0], [0], [0, 0, 1, 0], [], []>} : vector<8x16xf32>, vector<8x16xf32>, vector<8x8xf32> -> vector<8x8xf32>
    %348 = vector.extract_strided_slice %40 {offsets = [1, 0], sizes = [1, 8], strides = [1, 1]} : vector<2x8xf32> to vector<1x8xf32>
    %349 = vector.broadcast %348 : vector<1x8xf32> to vector<8x8xf32>
    %350 = arith.addf %347, %349 : vector<8x8xf32>
    %cst_185 = arith.constant dense<0xFF800000> : vector<8xf32>
    %351 = vector.multi_reduction <maximumf>, %350, %cst_185 [1] : vector<8x8xf32> to vector<8xf32>
    %352 = vector.shape_cast %351 : vector<8xf32> to vector<8x1xf32>
    %353 = vector.broadcast %352 : vector<8x1xf32> to vector<8x8xf32>
    %354 = arith.subf %350, %353 : vector<8x8xf32>
    %355 = math.exp %354 : vector<8x8xf32>
    %cst_186 = arith.constant dense<0.000000e+00> : vector<8xf32>
    %356 = vector.multi_reduction <add>, %355, %cst_186 [1] : vector<8x8xf32> to vector<8xf32>
    %357 = vector.shape_cast %356 : vector<8xf32> to vector<8x1xf32>
    %358 = tpu.reciprocal %357 {approx = true} : vector<8x1xf32> -> vector<8x1xf32>
    %359 = vector.broadcast %358 : vector<8x1xf32> to vector<8x8xf32>
    %360 = arith.mulf %355, %359 : vector<8x8xf32>
    %361 = vector.extract_strided_slice %326 {offsets = [8, 0], sizes = [8, 16], strides = [1, 1]} : vector<16x16xf32> to vector<8x16xf32>
    %cst_187 = arith.constant dense<0.000000e+00> : vector<8x16xf32>
    %362 = tpu.matmul %360, %361, %cst_187 {dimension_numbers = #tpu.dot_dimension_numbers<[1], [0], [0], [1], [0, 0, 1, 1], [], []>} : vector<8x8xf32>, vector<8x16xf32>, vector<8x16xf32> -> vector<8x16xf32>
    %363 = tpu.concatenate %344, %362 in 0 : vector<8x16xf32>, vector<8x16xf32> -> vector<16x16xf32>
    %c3_188 = arith.constant 3 : index
    %c0_189 = arith.constant 0 : index
    %c0_190 = arith.constant 0 : index
    %364 = vector.load %arg13[%c3_188, %c0_189, %c0_190] : memref<4x16x32xf32, #tpu.memory_space<vmem>>, vector<1x16x32xf32>
    %365 = vector.shape_cast %364 : vector<1x16x32xf32> to vector<16x32xf32>
    %cst_191 = arith.constant dense<0.000000e+00> : vector<16x32xf32>
    %366 = tpu.matmul %363, %365, %cst_191 {dimension_numbers = #tpu.dot_dimension_numbers<[1], [0], [0], [1], [0, 0, 1, 1], [], []>} : vector<16x16xf32>, vector<16x32xf32>, vector<16x32xf32> -> vector<16x32xf32>
    %367 = arith.addf %305, %366 : vector<16x32xf32>
    %c1_192 = arith.constant 1 : index
    %c0_193 = arith.constant 0 : index
    %c0_194 = arith.constant 0 : index
    %368 = vector.load %arg14[%c1_192, %c0_193, %c0_194] : memref<2x1x32xf32, #tpu.memory_space<vmem>>, vector<1x1x32xf32>
    %369 = vector.shape_cast %368 : vector<1x1x32xf32> to vector<1x32xf32>
    %370 = vector.broadcast %369 : vector<1x32xf32> to vector<16x32xf32>
    %371 = arith.addf %367, %370 : vector<16x32xf32>
    %372 = arith.addf %244, %371 : vector<16x32xf32>
    %c1_195 = arith.constant 1 : index
    %c0_196 = arith.constant 0 : index
    %c0_197 = arith.constant 0 : index
    %373 = vector.load %arg15[%c1_195, %c0_196, %c0_197] : memref<2x1x32xf32, #tpu.memory_space<vmem>>, vector<1x1x32xf32>
    %374 = vector.shape_cast %373 : vector<1x1x32xf32> to vector<1x32xf32>
    %c1_198 = arith.constant 1 : index
    %c0_199 = arith.constant 0 : index
    %c0_200 = arith.constant 0 : index
    %375 = vector.load %arg16[%c1_198, %c0_199, %c0_200] : memref<2x1x32xf32, #tpu.memory_space<vmem>>, vector<1x1x32xf32>
    %376 = vector.shape_cast %375 : vector<1x1x32xf32> to vector<1x32xf32>
    %cst_201 = arith.constant dense<0.000000e+00> : vector<16xf32>
    %377 = vector.multi_reduction <add>, %372, %cst_201 [1] : vector<16x32xf32> to vector<16xf32>
    %378 = vector.shape_cast %377 : vector<16xf32> to vector<16x1xf32>
    %cst_202 = arith.constant 3.200000e+01 : f32
    %379 = vector.broadcast %cst_202 : f32 to vector<16x1xf32>
    %380 = arith.divf %378, %379 : vector<16x1xf32>
    %381 = vector.broadcast %380 : vector<16x1xf32> to vector<16x32xf32>
    %382 = arith.subf %372, %381 : vector<16x32xf32>
    %383 = arith.mulf %382, %382 : vector<16x32xf32>
    %cst_203 = arith.constant dense<0.000000e+00> : vector<16xf32>
    %384 = vector.multi_reduction <add>, %383, %cst_203 [1] : vector<16x32xf32> to vector<16xf32>
    %385 = vector.shape_cast %384 : vector<16xf32> to vector<16x1xf32>
    %cst_204 = arith.constant 3.200000e+01 : f32
    %386 = vector.broadcast %cst_204 : f32 to vector<16x1xf32>
    %387 = arith.divf %385, %386 : vector<16x1xf32>
    %cst_205 = arith.constant 9.99999996E-13 : f32
    %388 = vector.broadcast %cst_205 : f32 to vector<16x1xf32>
    %389 = arith.addf %387, %388 : vector<16x1xf32>
    %390 = math.rsqrt %389 : vector<16x1xf32>
    %391 = vector.broadcast %390 : vector<16x1xf32> to vector<16x32xf32>
    %392 = arith.mulf %382, %391 : vector<16x32xf32>
    %393 = vector.broadcast %374 : vector<1x32xf32> to vector<16x32xf32>
    %394 = arith.mulf %392, %393 : vector<16x32xf32>
    %395 = vector.broadcast %376 : vector<1x32xf32> to vector<16x32xf32>
    %396 = arith.addf %394, %395 : vector<16x32xf32>
    %c1_206 = arith.constant 1 : index
    %c0_207 = arith.constant 0 : index
    %c0_208 = arith.constant 0 : index
    %397 = vector.load %arg17[%c1_206, %c0_207, %c0_208] : memref<2x32x64xf32, #tpu.memory_space<vmem>>, vector<1x32x64xf32>
    %398 = vector.shape_cast %397 : vector<1x32x64xf32> to vector<32x64xf32>
    %cst_209 = arith.constant dense<0.000000e+00> : vector<16x64xf32>
    %399 = tpu.matmul %396, %398, %cst_209 {dimension_numbers = #tpu.dot_dimension_numbers<[1], [0], [0], [1], [0, 0, 1, 1], [], []>} : vector<16x32xf32>, vector<32x64xf32>, vector<16x64xf32> -> vector<16x64xf32>
    %c1_210 = arith.constant 1 : index
    %c0_211 = arith.constant 0 : index
    %c0_212 = arith.constant 0 : index
    %400 = vector.load %arg18[%c1_210, %c0_211, %c0_212] : memref<2x1x64xf32, #tpu.memory_space<vmem>>, vector<1x1x64xf32>
    %401 = vector.shape_cast %400 : vector<1x1x64xf32> to vector<1x64xf32>
    %402 = vector.broadcast %401 : vector<1x64xf32> to vector<16x64xf32>
    %403 = arith.addf %399, %402 : vector<16x64xf32>
    %cst_213 = arith.constant 5.000000e-01 : f32
    %404 = vector.broadcast %cst_213 : f32 to vector<16x64xf32>
    %405 = arith.mulf %404, %403 : vector<16x64xf32>
    %cst_214 = arith.constant 4.471500e-02 : f32
    %406 = vector.broadcast %cst_214 : f32 to vector<16x64xf32>
    %407 = arith.mulf %406, %403 : vector<16x64xf32>
    %408 = arith.mulf %407, %403 : vector<16x64xf32>
    %409 = arith.mulf %408, %403 : vector<16x64xf32>
    %410 = arith.addf %403, %409 : vector<16x64xf32>
    %cst_215 = arith.constant 0.797884583 : f32
    %411 = vector.broadcast %cst_215 : f32 to vector<16x64xf32>
    %412 = arith.mulf %411, %410 : vector<16x64xf32>
    %413 = math.tanh %412 : vector<16x64xf32>
    %cst_216 = arith.constant 1.000000e+00 : f32
    %414 = vector.broadcast %cst_216 : f32 to vector<16x64xf32>
    %415 = arith.addf %414, %413 : vector<16x64xf32>
    %416 = arith.mulf %405, %415 : vector<16x64xf32>
    %c1_217 = arith.constant 1 : index
    %c0_218 = arith.constant 0 : index
    %c0_219 = arith.constant 0 : index
    %417 = vector.load %arg19[%c1_217, %c0_218, %c0_219] : memref<2x64x32xf32, #tpu.memory_space<vmem>>, vector<1x64x32xf32>
    %418 = vector.shape_cast %417 : vector<1x64x32xf32> to vector<64x32xf32>
    %cst_220 = arith.constant dense<0.000000e+00> : vector<16x32xf32>
    %419 = tpu.matmul %416, %418, %cst_220 {dimension_numbers = #tpu.dot_dimension_numbers<[1], [0], [0], [1], [0, 0, 1, 1], [], []>} : vector<16x64xf32>, vector<64x32xf32>, vector<16x32xf32> -> vector<16x32xf32>
    %c1_221 = arith.constant 1 : index
    %c0_222 = arith.constant 0 : index
    %c0_223 = arith.constant 0 : index
    %420 = vector.load %arg20[%c1_221, %c0_222, %c0_223] : memref<2x1x32xf32, #tpu.memory_space<vmem>>, vector<1x1x32xf32>
    %421 = vector.shape_cast %420 : vector<1x1x32xf32> to vector<1x32xf32>
    %422 = vector.broadcast %421 : vector<1x32xf32> to vector<16x32xf32>
    %423 = arith.addf %419, %422 : vector<16x32xf32>
    %424 = arith.addf %396, %423 : vector<16x32xf32>
    %c1_224 = arith.constant 1 : index
    %c0_225 = arith.constant 0 : index
    %c0_226 = arith.constant 0 : index
    %425 = vector.load %arg21[%c1_224, %c0_225, %c0_226] : memref<2x1x32xf32, #tpu.memory_space<vmem>>, vector<1x1x32xf32>
    %426 = vector.shape_cast %425 : vector<1x1x32xf32> to vector<1x32xf32>
    %c1_227 = arith.constant 1 : index
    %c0_228 = arith.constant 0 : index
    %c0_229 = arith.constant 0 : index
    %427 = vector.load %arg22[%c1_227, %c0_228, %c0_229] : memref<2x1x32xf32, #tpu.memory_space<vmem>>, vector<1x1x32xf32>
    %428 = vector.shape_cast %427 : vector<1x1x32xf32> to vector<1x32xf32>
    %cst_230 = arith.constant dense<0.000000e+00> : vector<16xf32>
    %429 = vector.multi_reduction <add>, %424, %cst_230 [1] : vector<16x32xf32> to vector<16xf32>
    %430 = vector.shape_cast %429 : vector<16xf32> to vector<16x1xf32>
    %cst_231 = arith.constant 3.200000e+01 : f32
    %431 = vector.broadcast %cst_231 : f32 to vector<16x1xf32>
    %432 = arith.divf %430, %431 : vector<16x1xf32>
    %433 = vector.broadcast %432 : vector<16x1xf32> to vector<16x32xf32>
    %434 = arith.subf %424, %433 : vector<16x32xf32>
    %435 = arith.mulf %434, %434 : vector<16x32xf32>
    %cst_232 = arith.constant dense<0.000000e+00> : vector<16xf32>
    %436 = vector.multi_reduction <add>, %435, %cst_232 [1] : vector<16x32xf32> to vector<16xf32>
    %437 = vector.shape_cast %436 : vector<16xf32> to vector<16x1xf32>
    %cst_233 = arith.constant 3.200000e+01 : f32
    %438 = vector.broadcast %cst_233 : f32 to vector<16x1xf32>
    %439 = arith.divf %437, %438 : vector<16x1xf32>
    %cst_234 = arith.constant 9.99999996E-13 : f32
    %440 = vector.broadcast %cst_234 : f32 to vector<16x1xf32>
    %441 = arith.addf %439, %440 : vector<16x1xf32>
    %442 = math.rsqrt %441 : vector<16x1xf32>
    %443 = vector.broadcast %442 : vector<16x1xf32> to vector<16x32xf32>
    %444 = arith.mulf %434, %443 : vector<16x32xf32>
    %445 = vector.broadcast %426 : vector<1x32xf32> to vector<16x32xf32>
    %446 = arith.mulf %444, %445 : vector<16x32xf32>
    %447 = vector.broadcast %428 : vector<1x32xf32> to vector<16x32xf32>
    %448 = arith.addf %446, %447 : vector<16x32xf32>
    %449 = vector.extract_strided_slice %448 {offsets = [0, 0], sizes = [1, 32], strides = [1, 1]} : vector<16x32xf32> to vector<1x32xf32>
    %450 = vector.extract_strided_slice %448 {offsets = [8, 0], sizes = [1, 32], strides = [1, 1]} : vector<16x32xf32> to vector<1x32xf32>
    %451 = tpu.concatenate %449, %450 in 0 : vector<1x32xf32>, vector<1x32xf32> -> vector<2x32xf32>
    %c0_235 = arith.constant 0 : index
    %c0_236 = arith.constant 0 : index
    %452 = vector.load %arg23[%c0_235, %c0_236] : memref<32x32xf32, #tpu.memory_space<vmem>>, vector<32x32xf32>
    %cst_237 = arith.constant dense<0.000000e+00> : vector<2x32xf32>
    %453 = tpu.matmul %451, %452, %cst_237 {dimension_numbers = #tpu.dot_dimension_numbers<[1], [0], [0], [1], [0, 0, 1, 1], [], []>} : vector<2x32xf32>, vector<32x32xf32>, vector<2x32xf32> -> vector<2x32xf32>
    %c0_238 = arith.constant 0 : index
    %c0_239 = arith.constant 0 : index
    %454 = vector.load %arg24[%c0_238, %c0_239] : memref<1x32xf32, #tpu.memory_space<vmem>>, vector<1x32xf32>
    %455 = vector.broadcast %454 : vector<1x32xf32> to vector<2x32xf32>
    %456 = arith.addf %453, %455 : vector<2x32xf32>
    %457 = math.tanh %456 : vector<2x32xf32>
    %c0_240 = arith.constant 0 : index
    %c0_241 = arith.constant 0 : index
    %458 = vector.load %arg25[%c0_240, %c0_241] : memref<32x4xf32, #tpu.memory_space<vmem>>, vector<32x4xf32>
    %cst_242 = arith.constant dense<0.000000e+00> : vector<2x4xf32>
    %459 = tpu.matmul %457, %458, %cst_242 {dimension_numbers = #tpu.dot_dimension_numbers<[1], [0], [0], [1], [0, 0, 1, 1], [], []>} : vector<2x32xf32>, vector<32x4xf32>, vector<2x4xf32> -> vector<2x4xf32>
    %c0_243 = arith.constant 0 : index
    %c0_244 = arith.constant 0 : index
    %460 = vector.load %arg26[%c0_243, %c0_244] : memref<1x4xf32, #tpu.memory_space<vmem>>, vector<1x4xf32>
    %461 = vector.broadcast %460 : vector<1x4xf32> to vector<2x4xf32>
    %462 = arith.addf %459, %461 : vector<2x4xf32>
    %c0_245 = arith.constant 0 : index
    %c0_246 = arith.constant 0 : index
    %463 = vector.load %arg27[%c0_245, %c0_246] : memref<2x4xf32, #tpu.memory_space<vmem>>, vector<2x4xf32>
    tpu.vector_store %arg27[%c0_245, %c0_246], %462 {strides = array<i32>} : memref<2x4xf32, #tpu.memory_space<vmem>>, vector<2x4xf32>,
    return
  }
}

</mosaic_0001>

<bundles_post_ra>
// kernel: tpu_custom_call.1
= control target key start
LH: loop header
LB: loop body
LE: loop exit
PB: predicated region body
PF: predicated region fallthrough
CT: control target
= control target key end

     0   :  { %s2771_s0 = inlined_call_operand.vmem [shape: s32[16,1], index: 0, kind: input, shape index: {}]   ;;  %s2772_s1 = inlined_call_operand.vmem [shape: f32[2,8], index: 1, kind: input, shape index: {}]   ;;  %s2773_s2 = inlined_call_operand.vmem [shape: f32[128,32], index: 2, kind: input, shape index: {}]   ;;  %s2774_s3 = inlined_call_operand.vmem [shape: f32[32,32], index: 3, kind: input, shape index: {}]   ;;  %s2775_s4 = inlined_call_operand.vmem [shape: f32[2,32], index: 4, kind: input, shape index: {}]   ;;  %s2776_s5 = inlined_call_operand.vmem [shape: f32[1,32], index: 5, kind: input, shape index: {}]   ;;  %s2777_s6 = inlined_call_operand.vmem [shape: f32[1,32], index: 6, kind: input, shape index: {}]   ;;  %s2778_s7 = inlined_call_operand.vmem [shape: f32[4,32,16], index: 7, kind: input, shape index: {}]   ;;  %s2779_s8 = inlined_call_operand.vmem [shape: f32[4,1,16], index: 8, kind: input, shape index: {}]   ;;  %s2780_s9 = inlined_call_operand.vmem [shape: f32[4,32,16], index: 9, kind: input, shape index: {}]   ;;  %s2781_s10 = inlined_call_operand.vmem [shape: f32[4,1,16], index: 10, kind: input, shape index: {}]   ;;  %s2782_s11 = inlined_call_operand.vmem [shape: f32[4,32,16], index: 11, kind: input, shape index: {}]   ;;  %s2783_s12 = inlined_call_operand.vmem [shape: f32[4,1,16], index: 12, kind: input, shape index: {}]   ;;  %s2784_s13 = inlined_call_operand.vmem [shape: f32[4,16,32], index: 13, kind: input, shape index: {}]   ;;  %s2785_s14 = inlined_call_operand.vmem [shape: f32[2,1,32], index: 14, kind: input, shape index: {}]   ;;  %s2786_s15 = inlined_call_operand.vmem [shape: f32[2,1,32], index: 15, kind: input, shape index: {}]   ;;  %s2787_s16 = inlined_call_operand.vmem [shape: f32[2,1,32], index: 16, kind: input, shape index: {}]   ;;  %s2788_s17 = inlined_call_operand.vmem [shape: f32[2,32,64], index: 17, kind: input, shape index: {}]   ;;  %s2789_s18 = inlined_call_operand.vmem [shape: f32[2,1,64], index: 18, kind: input, shape index: {}]   ;;  %s2790_s19 = inlined_call_operand.vmem [shape: f32[2,64,32], index: 19, kind: input, shape index: {}]   ;;  %s2791_s20 = inlined_call_operand.vmem [shape: f32[2,1,32], index: 20, kind: input, shape index: {}]   ;;  %s2792_s21 = inlined_call_operand.vmem [shape: f32[2,1,32], index: 21, kind: input, shape index: {}]   ;;  %s2793_s22 = inlined_call_operand.vmem [shape: f32[2,1,32], index: 22, kind: input, shape index: {}]   ;;  %s2794_s23 = inlined_call_operand.vmem [shape: f32[32,32], index: 23, kind: input, shape index: {}]   ;;  %s2795_s24 = inlined_call_operand.vmem [shape: f32[1,32], index: 24, kind: input, shape index: {}]   ;;  %s2796_s25 = inlined_call_operand.vmem [shape: f32[32,4], index: 25, kind: input, shape index: {}]   ;;  %s2797_s26 = inlined_call_operand.vmem [shape: f32[1,4], index: 26, kind: input, shape index: {}]   ;;  %s2798_s27 = inlined_call_operand.hbm [shape: f32[2,4], index: 27, kind: output, shape index: {}]  }
   0x1   :  { %2807 = sst [smem:[#allocation5_spill]] %s2771_s0 }
   0x2   :  { %2808 = sst [smem:[#allocation6_spill]] %s2772_s1 }
   0x3   :  { %2809 = sst [smem:[#allocation7_spill]] %s2773_s2 }
   0x4   :  { %2810 = sst [smem:[#allocation8_spill]] %s2774_s3 }
   0x5   :  { %2811 = sst [smem:[#allocation9_spill]] %s2775_s4 }
   0x6   :  { %2812 = sst [smem:[#allocation10_spill]] %s2776_s5 }
   0x7   :  { %2813 = sst [smem:[#allocation11_spill]] %s2777_s6 }
   0x8   :  { %2814 = sst [smem:[#allocation12_spill]] %s2778_s7 }
   0x9   :  { %2815 = sst [smem:[#allocation13_spill]] %s2779_s8 }
   0xa   :  { %2816 = sst [smem:[#allocation14_spill]] %s2780_s9 }
   0xb   :  { %2817 = sst [smem:[#allocation15_spill]] %s2781_s10 }
   0xc   :  { %2818 = sst [smem:[#allocation16_spill]] %s2782_s11 }
   0xd   :  { %2819 = sst [smem:[#allocation17_spill]] %s2793_s22 }
   0xe   :  { %s2820_s8 = sld [smem:[#allocation5_spill]]  ;;  %v2025_v2 = vmov 0  }
   0xf   :  { %s2821_s22 = sld [smem:[#allocation7_spill]]  ;;  %1903 = vset.pattern.permute.xlu0 %v2025_v2 }
  0x14   :  { %v87_v0 = vld [vmem:[%s2820_s8] sm:$0xff]  ;;  %v88_v6 = vld [vmem:[%s2820_s8 + $0x8] sm:$0xff] }
  0x15   :  { %v118_v1 = vld [vmem:[%s2821_s22 + $0x78] sm:$0xff]  ;;  %v117_v3 = vld [vmem:[%s2821_s22 + $0x70] sm:$0xff]  ;;  %92 = vperm.xlu0 %1903, %v87_v0   ;;  %v116_v4 = vld [vmem:[%s2821_s22 + $0x68] sm:$0xff] }
  0x16   :  { %120 = vmatpush.msra.mxu0 %v118_v1  ;;  %v115_v5 = vld [vmem:[%s2821_s22 + $0x60] sm:$0xff]  ;;  %v114_v7 = vld [vmem:[%s2821_s22 + $0x58] sm:$0xff]  ;;  %v113_v8 = vld [vmem:[%s2821_s22 + $0x50] sm:$0xff] }
  0x17   :  { %v112_v9 = vld [vmem:[%s2821_s22 + $0x48] sm:$0xff]  ;;  %v111_v10 = vld [vmem:[%s2821_s22 + $0x40] sm:$0xff]  ;;  %v110_v11 = vld [vmem:[%s2821_s22 + $0x38] sm:$0xff] }
  0x18   :  { %121 = vmatpush.msra.mxu0 %v117_v3  ;;  %v109_v12 = vld [vmem:[%s2821_s22 + $0x30] sm:$0xff] }
  0x1a   :  { %122 = vmatpush.msra.mxu0 %v116_v4 }
  0x1c   :  { %123 = vmatpush.msra.mxu0 %v115_v5 }
  0x1d   :  { %95 = vperm.xlu0 %1903, %v88_v6  }
  0x1e   :  { %124 = vmatpush.msra.mxu0 %v114_v7 }
  0x20   :  { %125 = vmatpush.msra.mxu0 %v113_v8 }
  0x22   :  { %126 = vmatpush.msra.mxu0 %v112_v9 }
  0x24   :  { %127 = vmatpush.msra.mxu0 %v111_v10 }
  0x25   :  { %32 = vsyncpa [#allocation3], 0  ;;  %v108_v13 = vld [vmem:[%s2821_s22 + $0x28] sm:$0xff]  ;;  %v107_v14 = vld [vmem:[%s2821_s22 + $0x20] sm:$0xff]  ;;  %v89_v19 = vlaneseq  ;;  %v2026_v22 = vmov 1.0   ;;  %s2822_s29 = sld [smem:[#allocation8_spill]] }
  0x26   :  { %128 = vmatpush.msra.mxu0 %v110_v11  ;;  %v106_v15 = vld [vmem:[%s2821_s22 + $0x18] sm:$0xff]  ;;  %v105_v16 = vld [vmem:[%s2821_s22 + $0x10] sm:$0xff]  ;;  %v104_v17 = vld [vmem:[%s2821_s22 + $0x8] sm:$0xff]  ;;  %s2823_s11 = sld [smem:[#allocation9_spill]]  ;;  %vm149_vm2 = vcmask 261120   ;;  %v2027_v34 = vmov 32.0  }
  0x27   :  { %v103_v18 = vld [vmem:[%s2821_s22] sm:$0xff]  ;;  %v90_v20 = vand.u32 127, %v89_v19  ;;  %1935 = vrcp.f32 %v2027_v34  ;;  %s2824_s3 = sld [smem:[#allocation12_spill]]  ;;  %vm314_vm10 = vcmask 130048   ;;  %vm341_vm11 = vcmask 64512  }
  0x28   :  { %129 = vmatpush.msra.mxu0 %v109_v12  ;;  %s2825_s30 = sld [smem:[#allocation14_spill]] }
  0x29   :  { %s2826_s28 = sld [smem:[#allocation16_spill]] }
  0x2a   :  { %130 = vmatpush.msra.mxu0 %v108_v13  ;;  %s2827_s22 = sld [smem:[#allocation10_spill]] }
  0x2b   :  { %v119_v24 = vld [vmem:[%s2822_s29] sm:$0xff]  ;;  %s2828_s4 = sld [smem:[#allocation11_spill]] }
  0x2c   :  { %131 = vmatpush.msra.mxu0 %v107_v14  ;;  %v1904_v25 = vld [vmem:[%s2823_s11] ss:$0 sm:$0xff]  ;;  %s2829_s8 = sld [smem:[#allocation15_spill]] }
  0x2d   :  { %v1936_v35 = vpop.eup %1935  ;;  %v217_v51 = vld [vmem:[%s2824_s3 + $0x18] sm:$0xff]  ;;  %v216_v54 = vld [vmem:[%s2824_s3 + $0x10] sm:$0xff]  ;;  %v215_v57 = vld [vmem:[%s2824_s3 + $0x8] sm:$0xff]  ;;  %s2830_s6 = sld [smem:[#allocation13_spill]] }
  0x2e   :  { %132 = vmatpush.msra.mxu0 %v106_v15  ;;  %v157_v36 = vmul.f32 32.0, %v1936_v35  ;;  %vm161_vm3 = vweird.f32 %v1936_v35  ;;  %v254_v52 = vld [vmem:[%s2825_s30 + $0x18] sm:$0xff]  ;;  %240 = vmatpush.msra.mxu1 %v217_v51  ;;  %v253_v55 = vld [vmem:[%s2825_s30 + $0x10] sm:$0xff]  ;;  %v252_v58 = vld [vmem:[%s2825_s30 + $0x8] sm:$0xff]  ;;  %s2831_s1 = sld [smem:[#allocation6_spill]] }
  0x2f   :  { %v285_v53 = vld [vmem:[%s2826_s28 + $0x18] sm:$0xff]  ;;  %271 = vmatpush.msra.mxu2 %v254_v52  ;;  %v284_v56 = vld [vmem:[%s2826_s28 + $0x10] sm:$0xff]  ;;  %v283_v59 = vld [vmem:[%s2826_s28 + $0x8] sm:$0xff] }
  0x30   :  { %133 = vmatpush.msra.mxu0 %v105_v16  ;;  %v158_v37 = vsub.f32 1.0, %v157_v36  ;;  %302 = vmatpush.msra.mxu3 %v285_v53  ;;  %v214_v60 = vld [vmem:[%s2824_s3] sm:$0xff] }
  0x31   :  { %241 = vmatpush.msra.mxu1 %v216_v54  ;;  %272 = vmatpush.msra.mxu2 %v253_v55  ;;  %v251_v61 = vld [vmem:[%s2825_s30] sm:$0xff] }
  0x32   :  { %134 = vmatpush.msra.mxu0 %v104_v17  ;;  %v159_v38 = vmul.f32 %v1936_v35, %v158_v37  ;;  %303 = vmatpush.msra.mxu3 %v284_v56  ;;  %v282_v62 = vld [vmem:[%s2826_s28] sm:$0xff] }
  0x33   :  { %242 = vmatpush.msra.mxu1 %v215_v57  ;;  %273 = vmatpush.msra.mxu2 %v252_v58  ;;  %v1905_v13 = vld [vmem:[%s2827_s22] ss:$0 sm:$0xff]  ;;  %v1910_v58 = vld [vmem:[%s2829_s8 + $0x1] ss:$0 sm:$0xff] }
  0x34   :  { %135 = vmatpush.msra.mxu0 %v103_v18  ;;  %v160_v39 = vadd.f32 %v1936_v35, %v159_v38  ;;  %304 = vmatpush.msra.mxu3 %v283_v59  ;;  %v1906_v16 = vld [vmem:[%s2828_s4] ss:$0 sm:$0xff]  ;;  %s2832_s4 = sld [smem:[#allocation17_spill]] }
  0x35   :  { %243 = vmatpush.msra.mxu1 %v214_v60  ;;  %274 = vmatpush.msra.mxu2 %v251_v61 }
  0x36   :  { %v2231_v40 = vsel %vm161_vm3, %v1936_v35, %v160_v39  ;;  %305 = vmatpush.msra.mxu3 %v282_v62  ;;  %vm850_vm3 = vcmask 523264  }
  0x87   :  { %v93_v21 = vpop.permute.xlu0 %92 }
  0x88   :  { %vm97_vm0 = vcmp.eq.s32.totalorder %v90_v20, %v93_v21 }
  0x89   :  { %1761 = vmatmul.msk.f32.vlgmr.msra.gmra.mxu0 %vm97_vm0, %v2026_v22 }
  0x8f   :  { %v96_v23 = vpop.permute.xlu0 %95 }
  0x90   :  { %vm98_vm1 = vcmp.eq.s32.totalorder %v90_v20, %v96_v23 }
  0x91   :  { %1762 = vmatmul.msk.f32.gmra.mxu0 %vm98_vm1, %v2026_v22 }
 0x106   :  { %v137_v26 = vpop.f32.mrf.mxu0 }
 0x107   :  { %v138_v27 = vadd.f32 %v137_v26, %v119_v24 }
 0x109   :  { %v145_v28 = vadd.f32 %v1904_v25, %v138_v27  ;;  %v1908_v27 = vld [vmem:[%s2829_s8] ss:$0 sm:$0xff] }
 0x10b   :  { %v150_v29 = vsel %vm149_vm2, %v145_v28, 0.0 }
 0x10c   :  { %151 = vadd.xlane.f32.xlu1 %v150_v29 }
 0x10e   :  { %v140_v30 = vpop.f32.mrf.mxu0 }
 0x10f   :  { %v141_v31 = vadd.f32 %v140_v30, %v119_v24  ;;  %v1907_v30 = vld [vmem:[%s2830_s6] ss:$0 sm:$0xff] }
 0x111   :  { %v146_v32 = vadd.f32 %v1904_v25, %v141_v31 }
 0x113   :  { %v153_v33 = vsel %vm149_vm2, %v146_v32, 0.0 }
 0x114   :  { %154 = vadd.xlane.f32.xlu2 %v153_v33 }
 0x17f   :  { %v152_v41 = vpop.xlane.xlu1 %151 }
 0x180   :  { %v163_v42 = vmul.f32 %v2231_v40, %v152_v41  ;;  %v1785_v41 = vld [vmem:[%s2825_s30 + $0x38] sm:$0xff] }
 0x182   :  { %v165_v43 = vsub.f32 %v145_v28, %v163_v42  ;;  %v1909_v28 = vld [vmem:[%s2783_s12] ss:$0 sm:$0xff] }
 0x184   :  { %v167_v44 = vmul.f32 %v165_v43, %v165_v43 }
 0x186   :  { %v169_v45 = vsel %vm149_vm2, %v167_v44, 0.0  ;;  %v1784_v44 = vld [vmem:[%s2825_s30 + $0x30] sm:$0xff] }
 0x187   :  { %170 = vadd.xlane.f32.xlu1 %v169_v45  ;;  %v155_v46 = vpop.xlane.xlu2 %154  ;;  %v1783_v45 = vld [vmem:[%s2825_s30 + $0x28] sm:$0xff] }
 0x188   :  { %v164_v47 = vmul.f32 %v2231_v40, %v155_v46  ;;  %v1782_v46 = vld [vmem:[%s2825_s30 + $0x20] sm:$0xff] }
 0x18a   :  { %v2236_v48 = vsub.f32 %v146_v32, %v164_v47  ;;  %v211_v47 = vld [vmem:[%s2831_s1] sm:$0x3] }
 0x18c   :  { %v168_v49 = vmul.f32 %v2236_v48, %v2236_v48 }
 0x18e   :  { %v172_v50 = vsel %vm149_vm2, %v168_v49, 0.0 }
 0x18f   :  { %173 = vadd.xlane.f32.xlu2 %v172_v50 }
 0x1fa   :  { %v171_v63 = vpop.xlane.xlu1 %170 }
 0x1fb   :  { %v175_v0 = vmul.f32 %v171_v63, %v2231_v40 }
 0x1fd   :  { %v177_v1 = vadd.f32 1e-12, %v175_v0 }
 0x1ff   :  { %1937 = vrsqrt.f32 %v177_v1  ;;  %vm185_vm5 = vweird.f32 %v177_v1 }
 0x202   :  { %v174_v2 = vpop.xlane.xlu2 %173 }
 0x203   :  { %v176_v3 = vmul.f32 %v174_v2, %v2231_v40 }
 0x205   :  { %v1938_v4 = vpop.eup %1937  ;;  %v178_v5 = vadd.f32 1e-12, %v176_v3 }
 0x206   :  { %v180_v6 = vmul.f32 %v1938_v4, %v177_v1  ;;  %vm186_vm4 = vweird.f32 %v1938_v4 }
 0x207   :  { %1939 = vrsqrt.f32 %v178_v5  ;;  %vm187_vm6 = vmor %vm185_vm5, %vm186_vm4  ;;  %vm195_vm8 = vweird.f32 %v178_v5 }
 0x208   :  { %v181_v7 = vmul.f32 %v1938_v4, %v180_v6 }
 0x20a   :  { %v182_v8 = vmul.f32 0.5, %v181_v7 }
 0x20c   :  { %v183_v9 = vsub.f32 1.5, %v182_v8 }
 0x20d   :  { %v1940_v10 = vpop.eup %1939 }
 0x20e   :  { %v184_v11 = vmul.f32 %v1938_v4, %v183_v9  ;;  %v190_v12 = vmul.f32 %v1940_v10, %v178_v5  ;;  %vm196_vm7 = vweird.f32 %v1940_v10  ;;  %v1778_v9 = vld [vmem:[%s2824_s3 + $0x38] sm:$0xff] }
 0x20f   :  { %vm197_vm9 = vmor %vm195_vm8, %vm196_vm7 }
 0x210   :  { %v188_v14 = vsel %vm187_vm6, %v1938_v4, %v184_v11  ;;  %v191_v15 = vmul.f32 %v1940_v10, %v190_v12  ;;  %v1776_v11 = vld [vmem:[%s2824_s3 + $0x28] sm:$0xff]  ;;  %v1775_v12 = vld [vmem:[%s2824_s3 + $0x20] sm:$0xff] }
 0x211   :  { %v199_v17 = vmul.f32 %v188_v14, %v165_v43  ;;  %v1791_v14 = vld [vmem:[%s2826_s28 + $0x30] sm:$0xff] }
 0x212   :  { %v192_v18 = vmul.f32 0.5, %v191_v15  ;;  %v1790_v15 = vld [vmem:[%s2826_s28 + $0x28] sm:$0xff] }
 0x213   :  { %v204_v19 = vmul.f32 %v1905_v13, %v199_v17 }
 0x214   :  { %v193_v20 = vsub.f32 1.5, %v192_v18 }
 0x215   :  { %v2285_v21 = vadd.f32 %v1906_v16, %v204_v19 }
 0x216   :  { %v194_v22 = vmul.f32 %v1940_v10, %v193_v20 }
 0x217   :  { %1763 = vmatmul.msk.f32.vlgmr.msra.gmra.mxu1 %vm149_vm2, %v2285_v21  ;;  %1765 = vmatmul.msk.f32.vlgmr.msra.gmra.mxu2 %vm149_vm2, %v2285_v21 }
 0x218   :  { %v198_v23 = vsel %vm197_vm9, %v1940_v10, %v194_v22  ;;  %1767 = vmatmul.msk.f32.vlgmr.msra.gmra.mxu3 %vm149_vm2, %v2285_v21  ;;  %v1777_v10 = vld [vmem:[%s2824_s3 + $0x30] sm:$0xff] }
 0x219   :  { %v200_v24 = vmul.f32 %v198_v23, %v2236_v48  ;;  %v212_v48 = vsub.f32 1.0, %v211_v47 }
 0x21b   :  { %v205_v25 = vmul.f32 %v1905_v13, %v200_v24  ;;  %v213_v49 = vmul.f32 -10000.0, %v212_v48  ;;  %v1792_v13 = vld [vmem:[%s2826_s28 + $0x38] sm:$0xff] }
 0x21d   :  { %v2294_v26 = vadd.f32 %v1906_v16, %v205_v25  ;;  %v2334_v50 = vperm.slane %v213_v49, 0  ;;  %v2338_v54 = vperm.slane %v213_v49, 1  ;;  %v1789_v16 = vld [vmem:[%s2826_s28 + $0x20] sm:$0xff] }
 0x21e   :  { %v1911_v25 = vld [vmem:[%s2830_s6 + $0x1] ss:$0 sm:$0xff] }
 0x21f   :  { %1764 = vmatmul.msk.f32.gmra.mxu1 %vm149_vm2, %v2294_v26  ;;  %1766 = vmatmul.msk.f32.gmra.mxu2 %vm149_vm2, %v2294_v26 }
 0x220   :  { %1768 = vmatmul.msk.f32.gmra.mxu3 %vm149_vm2, %v2294_v26 }
 0x294   :  { %v245_v29 = vpop.f32.mrf.mxu1 }
 0x295   :  { %v246_v35 = vadd.f32 %v1907_v30, %v245_v29 }
 0x29a   :  { %v276_v31 = vpop.f32.mrf.mxu2 }
 0x29b   :  { %v277_v32 = vadd.f32 %v1908_v27, %v276_v31  ;;  %v307_v33 = vpop.f32.mrf.mxu3 }
 0x29c   :  { %v308_v34 = vadd.f32 %v1909_v28, %v307_v33  ;;  %v248_v37 = vpop.f32.mrf.mxu1 }
 0x29d   :  { %1769 = vmatpush.xpose.msk.msrb.mxu1 %vm314_vm10, %v277_v32  ;;  %v249_v43 = vadd.f32 %v1907_v30, %v248_v37  ;;  %v1912_v30 = vld [vmem:[%s2783_s12 + $0x1] ss:$0 sm:$0xff] }
 0x29e   :  { %371 = vmatpush.msrb.mxu2 %v308_v34 }
 0x2a0   :  { %1770 = vmatmul.msk.f32.vlgmr.msrb.gmra.mxu1 %vm314_vm10, %v246_v35  ;;  %461 = vmatpush.msra.mxu2 %v1778_v9 }
 0x2a2   :  { %v279_v36 = vpop.f32.mrf.mxu2  ;;  %462 = vmatpush.msra.mxu2 %v1777_v10 }
 0x2a3   :  { %v280_v38 = vadd.f32 %v1908_v27, %v279_v36  ;;  %v310_v39 = vpop.f32.mrf.mxu3 }
 0x2a4   :  { %v311_v42 = vadd.f32 %v1909_v28, %v310_v39  ;;  %463 = vmatpush.msra.mxu2 %v1776_v11 }
 0x2a5   :  { %1772 = vmatpush.xpose.msk.msrb.mxu3 %vm314_vm10, %v280_v38 }
 0x2a6   :  { %432 = vmatpush.msra.mxu1 %v311_v42  ;;  %464 = vmatpush.msra.mxu2 %v1775_v12 }
 0x2a8   :  { %1773 = vmatmul.msk.f32.vlgmr.msrb.gmra.mxu3 %vm314_vm10, %v249_v43  ;;  %527 = vmatpush.msrb.mxu1 %v1792_v13 }
 0x2a9   :  { %494 = vmatpush.msra.mxu3 %v1785_v41 }
 0x2aa   :  { %528 = vmatpush.msrb.mxu1 %v1791_v14 }
 0x2ab   :  { %495 = vmatpush.msra.mxu3 %v1784_v44 }
 0x2ac   :  { %529 = vmatpush.msrb.mxu1 %v1790_v15 }
 0x2ad   :  { %496 = vmatpush.msra.mxu3 %v1783_v45 }
 0x2ae   :  { %530 = vmatpush.msrb.mxu1 %v1789_v16 }
 0x2af   :  { %497 = vmatpush.msra.mxu3 %v1782_v46 }
 0x2b0   :  { %1787 = vmatmul.msk.f32.vlgmr.msra.gmra.mxu3 %vm149_vm2, %v2285_v21 }
 0x2b8   :  { %1788 = vmatmul.msk.f32.gmra.mxu3 %vm149_vm2, %v2294_v26 }
 0x31d   :  { %v338_v51 = vpop.f32.mrf.mxu1 }
 0x31e   :  { %v339_v52 = vadd.f32 %v338_v51, %v2334_v50 }
 0x320   :  { %v342_v53 = vsel %vm341_vm11, %v339_v52, -inf }
 0x321   :  { %343 = vmax.xlane.f32.xlu0 %v342_v53 }
 0x32b   :  { %v400_v55 = vpop.f32.mrf.mxu3 }
 0x32c   :  { %v401_v56 = vadd.f32 %v400_v55, %v2338_v54 }
 0x32e   :  { %v403_v57 = vsel %vm341_vm11, %v401_v56, -inf }
 0x32f   :  { %404 = vmax.xlane.f32.xlu2 %v403_v57  ;;  %v437_v57 = vld [vmem:[%s2784_s13] sm:$0xff] }
 0x333   :  { %v499_v59 = vpop.f32.mrf.mxu3 }
 0x334   :  { %v500_v60 = vadd.f32 %v1910_v58, %v499_v59 }
 0x336   :  { %1796 = vmatpush.xpose.msk.msrb.mxu0 %vm314_vm10, %v500_v60 }
 0x33b   :  { %v502_v61 = vpop.f32.mrf.mxu3 }
 0x33c   :  { %v503_v62 = vadd.f32 %v1910_v58, %v502_v61  ;;  %v1803_v58 = vld [vmem:[%s2784_s13 + $0x18] sm:$0xff] }
 0x33e   :  { %1799 = vmatpush.xpose.msk.msrb.mxu3 %vm314_vm10, %v503_v62 }
 0x394   :  { %v344_v63 = vpop.xlane.xlu0 %343 }
 0x395   :  { %v345_v0 = vsub.f32 %v339_v52, %v344_v63 }
 0x397   :  { %v346_v1 = vmul.f32 1.442695, %v345_v0 }
 0x399   :  { %1941 = vpow2.f32 %v346_v1  ;;  %v1802_v1 = vld [vmem:[%s2784_s13 + $0x10] sm:$0xff] }
 0x39f   :  { %v1942_v2 = vpop.eup %1941 }
 0x3a0   :  { %v348_v3 = vsel %vm341_vm11, %v1942_v2, 0.0 }
 0x3a1   :  { %349 = vadd.xlane.f32.xlu1 %v348_v3 }
 0x3a2   :  { %v405_v4 = vpop.xlane.xlu2 %404 }
 0x3a3   :  { %v406_v5 = vsub.f32 %v401_v56, %v405_v4  ;;  %v438_v56 = vld [vmem:[%s2784_s13 + $0x8] sm:$0xff] }
 0x3a5   :  { %v407_v6 = vmul.f32 1.442695, %v406_v5  ;;  %v1913_v5 = vld [vmem:[%s2785_s14] ss:$0 sm:$0xff] }
 0x3a7   :  { %1943 = vpow2.f32 %v407_v6 }
 0x3ad   :  { %v1944_v7 = vpop.eup %1943 }
 0x3ae   :  { %v409_v8 = vsel %vm341_vm11, %v1944_v7, 0.0 }
 0x3af   :  { %410 = vadd.xlane.f32.xlu1 %v409_v8 }
 0x414   :  { %v350_v17 = vpop.xlane.xlu1 %349 }
 0x415   :  { %1945 = vrcp.f32 %v350_v17 }
 0x41b   :  { %v1946_v18 = vpop.eup %1945 }
 0x41c   :  { %v352_v19 = vmul.f32 %v1946_v18, %v1942_v2 }
 0x41e   :  { %1771 = vmatmul.msk.f32.vlgmr.msrb.gmra.mxu2 %vm341_vm11, %v352_v19 }
 0x422   :  { %v411_v20 = vpop.xlane.xlu1 %410 }
 0x423   :  { %1947 = vrcp.f32 %v411_v20 }
 0x426   :  { %1780 = vmatmul.msk.f32.vlgmr.msra.gmra.mxu2 %vm149_vm2, %v2285_v21 }
 0x429   :  { %v1948_v22 = vpop.eup %1947 }
 0x42a   :  { %v413_v23 = vmul.f32 %v1948_v22, %v1944_v7 }
 0x42c   :  { %1774 = vmatmul.msk.f32.vlgmr.msra.gmra.mxu1 %vm341_vm11, %v413_v23 }
 0x42d   :  { %681 = vmatpush.msra.mxu1 %v1803_v58 }
 0x42e   :  { %1781 = vmatmul.msk.f32.gmra.mxu2 %vm149_vm2, %v2294_v26 }
 0x42f   :  { %682 = vmatpush.msra.mxu1 %v1802_v1  ;;  %v842_v1 = vld [vmem:[%s2790_s19 + $0x20] sm:$0xff] }
 0x434   :  { %1794 = vmatmul.msk.f32.vlgmr.msrb.gmra.mxu1 %vm149_vm2, %v2285_v21 }
 0x43c   :  { %1795 = vmatmul.msk.f32.gmra.mxu1 %vm149_vm2, %v2294_v26 }
 0x4a1   :  { %v373_v24 = vpop.f32.mrf.mxu2 }
 0x4a9   :  { %v434_v27 = vpop.f32.mrf.mxu1  ;;  %v466_v28 = vpop.f32.mrf.mxu2 }
 0x4aa   :  { %v467_v29 = vadd.f32 %v1911_v25, %v466_v28  ;;  %v785_v28 = vld [vmem:[%s2788_s17 + $0x10] sm:$0xff] }
 0x4ac   :  { %1797 = vmatmul.msk.f32.vlgmr.msrb.gmra.mxu0 %vm314_vm10, %v467_v29  ;;  %v784_v29 = vld [vmem:[%s2788_s17 + $0x8] sm:$0xff] }
 0x4b1   :  { %v469_v31 = vpop.f32.mrf.mxu2  ;;  %v532_v32 = vpop.f32.mrf.mxu1 }
 0x4b2   :  { %v470_v33 = vadd.f32 %v1911_v25, %v469_v31  ;;  %v533_v34 = vadd.f32 %v1912_v30, %v532_v32 }
 0x4b4   :  { %593 = vmatpush.msrb.mxu2 %v533_v34  ;;  %1800 = vmatmul.msk.f32.vlgmr.msrb.gmra.mxu3 %vm314_vm10, %v470_v33 }
 0x4b6   :  { %710 = vmatpush.msra.mxu2 %v438_v56 }
 0x4b8   :  { %711 = vmatpush.msra.mxu2 %v437_v57 }
 0x4b9   :  { %v535_v35 = vpop.f32.mrf.mxu1 }
 0x4ba   :  { %v536_v36 = vadd.f32 %v1912_v30, %v535_v35  ;;  %v783_v30 = vld [vmem:[%s2788_s17] sm:$0xff] }
 0x4bc   :  { %653 = vmatpush.msra.mxu0 %v536_v36 }
 0x529   :  { %v561_v37 = vpop.f32.mrf.mxu0 }
 0x52a   :  { %v562_v38 = vadd.f32 %v561_v37, %v2334_v50 }
 0x52c   :  { %v564_v39 = vsel %vm341_vm11, %v562_v38, -inf }
 0x52d   :  { %565 = vmax.xlane.f32.xlu2 %v564_v39 }
 0x537   :  { %v621_v41 = vpop.f32.mrf.mxu3 }
 0x538   :  { %v622_v42 = vadd.f32 %v621_v41, %v2338_v54 }
 0x53a   :  { %v624_v43 = vsel %vm341_vm11, %v622_v42, -inf }
 0x53b   :  { %625 = vmax.xlane.f32.xlu2 %v624_v43 }
 0x5a0   :  { %v566_v44 = vpop.xlane.xlu2 %565 }
 0x5a1   :  { %v567_v45 = vsub.f32 %v562_v38, %v566_v44 }
 0x5a3   :  { %v568_v46 = vmul.f32 1.442695, %v567_v45 }
 0x5a5   :  { %1949 = vpow2.f32 %v568_v46  ;;  %v1914_v46 = vld [vmem:[%s2786_s15] ss:$0 sm:$0xff] }
 0x5ab   :  { %v1950_v47 = vpop.eup %1949 }
 0x5ac   :  { %v570_v48 = vsel %vm341_vm11, %v1950_v47, 0.0 }
 0x5ad   :  { %571 = vadd.xlane.f32.xlu1 %v570_v48 }
 0x5ae   :  { %v626_v49 = vpop.xlane.xlu2 %625 }
 0x5af   :  { %v627_v51 = vsub.f32 %v622_v42, %v626_v49 }
 0x5b1   :  { %v628_v52 = vmul.f32 1.442695, %v627_v51  ;;  %v1915_v51 = vld [vmem:[%s2787_s16] ss:$0 sm:$0xff] }
 0x5b3   :  { %1951 = vpow2.f32 %v628_v52 }
 0x5b9   :  { %v1952_v53 = vpop.eup %1951 }
 0x5ba   :  { %v630_v55 = vsel %vm341_vm11, %v1952_v53, 0.0 }
 0x5bb   :  { %631 = vadd.xlane.f32.xlu1 %v630_v55 }
 0x620   :  { %v572_v59 = vpop.xlane.xlu1 %571 }
 0x621   :  { %1953 = vrcp.f32 %v572_v59 }
 0x627   :  { %v1954_v60 = vpop.eup %1953 }
 0x628   :  { %v574_v61 = vmul.f32 %v1954_v60, %v1950_v47 }
 0x62a   :  { %1798 = vmatmul.msk.f32.vlgmr.msrb.gmra.mxu2 %vm341_vm11, %v574_v61 }
 0x62e   :  { %v632_v62 = vpop.xlane.xlu1 %631 }
 0x62f   :  { %1955 = vrcp.f32 %v632_v62  ;;  %v845_v62 = vld [vmem:[%s2790_s19 + $0x38] sm:$0xff] }
 0x630   :  { %865 = vmatpush.msrb.mxu0 %v845_v62  ;;  %v1826_v62 = vld [vmem:[%s2826_s28 + $0x40] sm:$0xff] }
 0x632   :  { %1806 = vmatmul.msk.f32.vlgmr.msra.gmra.mxu2 %vm314_vm10, %v373_v24 }
 0x635   :  { %v1956_v63 = vpop.eup %1955 }
 0x636   :  { %v634_v0 = vmul.f32 %v1956_v63, %v1952_v53  ;;  %v844_v63 = vld [vmem:[%s2790_s19 + $0x30] sm:$0xff] }
 0x637   :  { %866 = vmatpush.msrb.mxu0 %v844_v63 }
 0x638   :  { %1801 = vmatmul.msk.f32.vlgmr.msra.gmra.mxu0 %vm341_vm11, %v634_v0  ;;  %v843_v0 = vld [vmem:[%s2790_s19 + $0x28] sm:$0xff] }
 0x639   :  { %867 = vmatpush.msrb.mxu0 %v843_v0 }
 0x63a   :  { %1807 = vmatmul.msk.f32.gmra.mxu2 %vm314_vm10, %v434_v27 }
 0x63b   :  { %868 = vmatpush.msrb.mxu0 %v842_v1 }
 0x6ad   :  { %v595_v2 = vpop.f32.mrf.mxu2 }
 0x6ae   :  { %1804 = vmatmul.msk.f32.vlgmr.msra.gmra.mxu1 %vm314_vm10, %v595_v2  ;;  %v841_v2 = vld [vmem:[%s2790_s19 + $0x18] sm:$0xff] }
 0x6af   :  { %869 = vmatpush.msrb.mxu0 %v841_v2 }
 0x6b5   :  { %v655_v3 = vpop.f32.mrf.mxu0  ;;  %v713_v4 = vpop.f32.mrf.mxu2 }
 0x6b6   :  { %1805 = vmatmul.msk.f32.gmra.mxu1 %vm314_vm10, %v655_v3  ;;  %v840_v3 = vld [vmem:[%s2790_s19 + $0x10] sm:$0xff] }
 0x6b7   :  { %870 = vmatpush.msrb.mxu0 %v840_v3 }
 0x6bd   :  { %v716_v11 = vpop.f32.mrf.mxu2 }
 0x72b   :  { %v684_v6 = vpop.f32.mrf.mxu1 }
 0x72c   :  { %v714_v7 = vadd.f32 %v713_v4, %v684_v6  ;;  %v839_v4 = vld [vmem:[%s2790_s19 + $0x8] sm:$0xff]  ;;  %v1916_v6 = vld [vmem:[%s2789_s18] ss:$0 sm:$0xff] }
 0x72d   :  { %871 = vmatpush.msrb.mxu0 %v839_v4 }
 0x72e   :  { %v723_v8 = vadd.f32 %v1913_v5, %v714_v7 }
 0x730   :  { %v725_v9 = vadd.f32 %v723_v8, %v2285_v21 }
 0x732   :  { %v729_v10 = vsel %vm149_vm2, %v725_v9, 0.0 }
 0x733   :  { %730 = vadd.xlane.f32.xlu2 %v729_v10  ;;  %v687_v12 = vpop.f32.mrf.mxu1 }
 0x734   :  { %v717_v13 = vadd.f32 %v716_v11, %v687_v12 }
 0x736   :  { %v724_v14 = vadd.f32 %v1913_v5, %v717_v13  ;;  %v838_v5 = vld [vmem:[%s2790_s19] sm:$0xff] }
 0x737   :  { %872 = vmatpush.msrb.mxu0 %v838_v5 }
 0x738   :  { %v726_v15 = vadd.f32 %v724_v14, %v2294_v26  ;;  %v786_v26 = vld [vmem:[%s2788_s17 + $0x18] sm:$0xff] }
 0x739   :  { %809 = vmatpush.msra.mxu3 %v786_v26 }
 0x73a   :  { %v732_v16 = vsel %vm149_vm2, %v726_v15, 0.0 }
 0x73b   :  { %733 = vadd.xlane.f32.xlu2 %v732_v16  ;;  %810 = vmatpush.msra.mxu3 %v785_v28 }
 0x73d   :  { %811 = vmatpush.msra.mxu3 %v784_v29  ;;  %v1917_v29 = vld [vmem:[%s2791_s20] ss:$0 sm:$0xff] }
 0x73f   :  { %812 = vmatpush.msra.mxu3 %v783_v30 }
 0x7a6   :  { %v731_v17 = vpop.xlane.xlu2 %730 }
 0x7a7   :  { %v735_v18 = vmul.f32 %v731_v17, %v2231_v40 }
 0x7a9   :  { %v737_v19 = vsub.f32 %v725_v9, %v735_v18 }
 0x7ab   :  { %v739_v20 = vmul.f32 %v737_v19, %v737_v19 }
 0x7ad   :  { %v741_v22 = vsel %vm149_vm2, %v739_v20, 0.0 }
 0x7ae   :  { %742 = vadd.xlane.f32.xlu1 %v741_v22  ;;  %v734_v21 = vpop.xlane.xlu2 %733 }
 0x7af   :  { %v736_v23 = vmul.f32 %v734_v21, %v2231_v40 }
 0x7b1   :  { %v738_v24 = vsub.f32 %v726_v15, %v736_v23 }
 0x7b3   :  { %v740_v25 = vmul.f32 %v738_v24, %v738_v24 }
 0x7b5   :  { %v744_v27 = vsel %vm149_vm2, %v740_v25, 0.0 }
 0x7b6   :  { %745 = vadd.xlane.f32.xlu1 %v744_v27 }
 0x821   :  { %v743_v31 = vpop.xlane.xlu1 %742 }
 0x822   :  { %v747_v32 = vmul.f32 %v743_v31, %v2231_v40 }
 0x824   :  { %v749_v33 = vadd.f32 1e-12, %v747_v32 }
 0x826   :  { %1957 = vrsqrt.f32 %v749_v33  ;;  %vm757_vm13 = vweird.f32 %v749_v33 }
 0x829   :  { %v746_v34 = vpop.xlane.xlu1 %745 }
 0x82a   :  { %v748_v35 = vmul.f32 %v746_v34, %v2231_v40 }
 0x82c   :  { %v1958_v36 = vpop.eup %1957  ;;  %v750_v37 = vadd.f32 1e-12, %v748_v35 }
 0x82d   :  { %v752_v38 = vmul.f32 %v1958_v36, %v749_v33  ;;  %vm758_vm12 = vweird.f32 %v1958_v36 }
 0x82e   :  { %1959 = vrsqrt.f32 %v750_v37  ;;  %vm759_vm14 = vmor %vm757_vm13, %vm758_vm12  ;;  %vm767_vm0 = vweird.f32 %v750_v37 }
 0x82f   :  { %v753_v39 = vmul.f32 %v1958_v36, %v752_v38 }
 0x831   :  { %v754_v41 = vmul.f32 0.5, %v753_v39 }
 0x833   :  { %v755_v42 = vsub.f32 1.5, %v754_v41 }
 0x834   :  { %v1960_v43 = vpop.eup %1959 }
 0x835   :  { %v756_v44 = vmul.f32 %v1958_v36, %v755_v42  ;;  %v762_v45 = vmul.f32 %v1960_v43, %v750_v37  ;;  %vm768_vm15 = vweird.f32 %v1960_v43 }
 0x836   :  { %vm769_vm1 = vmor %vm767_vm0, %vm768_vm15 }
 0x837   :  { %v760_v47 = vsel %vm759_vm14, %v1958_v36, %v756_v44  ;;  %v763_v48 = vmul.f32 %v1960_v43, %v762_v45 }
 0x838   :  { %v771_v49 = vmul.f32 %v760_v47, %v737_v19 }
 0x839   :  { %v764_v52 = vmul.f32 0.5, %v763_v48 }
 0x83a   :  { %v776_v53 = vmul.f32 %v1914_v46, %v771_v49  ;;  %v1815_v49 = vld [vmem:[%s2824_s3 + $0x58] sm:$0xff] }
 0x83b   :  { %v765_v55 = vsub.f32 1.5, %v764_v52  ;;  %v1829_v52 = vld [vmem:[%s2826_s28 + $0x58] sm:$0xff]  ;;  %966 = vmatpush.msrb.mxu1 %v1815_v49  ;;  %v1856_v49 = vld [vmem:[%s2826_s28 + $0x68] sm:$0xff] }
 0x83c   :  { %v781_v56 = vadd.f32 %v1915_v51, %v776_v53  ;;  %1032 = vmatpush.msrb.mxu3 %v1829_v52  ;;  %v1814_v53 = vld [vmem:[%s2824_s3 + $0x50] sm:$0xff] }
 0x83d   :  { %v766_v57 = vmul.f32 %v1960_v43, %v765_v55  ;;  %v1821_v55 = vld [vmem:[%s2825_s30 + $0x50] sm:$0xff]  ;;  %967 = vmatpush.msrb.mxu1 %v1814_v53 }
 0x83e   :  { %1808 = vmatmul.msk.f32.vlgmr.msra.gmra.mxu3 %vm149_vm2, %v781_v56 }
 0x83f   :  { %v770_v58 = vsel %vm769_vm1, %v1960_v43, %v766_v57  ;;  %v1813_v57 = vld [vmem:[%s2824_s3 + $0x48] sm:$0xff] }
 0x840   :  { %v772_v59 = vmul.f32 %v770_v58, %v738_v24  ;;  %v1820_v58 = vld [vmem:[%s2825_s30 + $0x48] sm:$0xff]  ;;  %968 = vmatpush.msrb.mxu1 %v1813_v57 }
 0x842   :  { %v777_v60 = vmul.f32 %v1914_v46, %v772_v59  ;;  %v1827_v59 = vld [vmem:[%s2826_s28 + $0x48] sm:$0xff] }
 0x844   :  { %v782_v61 = vadd.f32 %v1915_v51, %v777_v60  ;;  %v1822_v51 = vld [vmem:[%s2825_s30 + $0x58] sm:$0xff]  ;;  %v1812_v60 = vld [vmem:[%s2824_s3 + $0x40] sm:$0xff] }
 0x845   :  { %999 = vmatpush.msrb.mxu2 %v1822_v51  ;;  %969 = vmatpush.msrb.mxu1 %v1812_v60  ;;  %v1855_v51 = vld [vmem:[%s2826_s28 + $0x60] sm:$0xff] }
 0x846   :  { %1809 = vmatmul.msk.f32.gmra.mxu3 %vm149_vm2, %v782_v61 }
 0x847   :  { %1000 = vmatpush.msrb.mxu2 %v1821_v55 }
 0x849   :  { %1001 = vmatpush.msrb.mxu2 %v1820_v58 }
 0x8c1   :  { %v814_v7 = vpop.f32.mrf.mxu3 }
 0x8c2   :  { %v815_v8 = vadd.f32 %v1916_v6, %v814_v7 }
 0x8c4   :  { %v822_v9 = vmul.f32 0.044715, %v815_v8  ;;  %v820_v21 = vmul.f32 0.5, %v815_v8 }
 0x8c6   :  { %v824_v10 = vmul.f32 %v822_v9, %v815_v8 }
 0x8c8   :  { %v826_v11 = vmul.f32 %v824_v10, %v815_v8 }
 0x8c9   :  { %v817_v12 = vpop.f32.mrf.mxu3 }
 0x8ca   :  { %v828_v13 = vadd.f32 %v826_v11, %v815_v8  ;;  %v818_v14 = vadd.f32 %v1916_v6, %v817_v12 }
 0x8cc   :  { %v830_v15 = vmul.f32 0.7978846, %v828_v13  ;;  %v823_v16 = vmul.f32 0.044715, %v818_v14  ;;  %v821_v27 = vmul.f32 0.5, %v818_v14 }
 0x8cd   :  { %v1918_v13 = vld [vmem:[%s2792_s21] ss:$0 sm:$0xff] }
 0x8ce   :  { %1961 = vtanh.f32 %v830_v15  ;;  %v825_v17 = vmul.f32 %v823_v16, %v818_v14  ;;  %v1919_v16 = vld [vmem:[%s2832_s4] ss:$0 sm:$0xff] }
 0x8d0   :  { %v827_v18 = vmul.f32 %v825_v17, %v818_v14 }
 0x8d2   :  { %v829_v19 = vadd.f32 %v827_v18, %v818_v14 }
 0x8d4   :  { %v1962_v20 = vpop.eup %1961  ;;  %v831_v22 = vmul.f32 0.7978846, %v829_v19 }
 0x8d5   :  { %v834_v23 = vadd.f32 1.0, %v1962_v20 }
 0x8d6   :  { %1963 = vtanh.f32 %v831_v22 }
 0x8d7   :  { %v836_v24 = vmul.f32 %v834_v23, %v820_v21 }
 0x8d9   :  { %1810 = vmatmul.msk.f32.vlgmr.msrb.gmra.mxu0 %vm850_vm3, %v836_v24 }
 0x8dc   :  { %v1964_v25 = vpop.eup %1963 }
 0x8dd   :  { %v835_v26 = vadd.f32 1.0, %v1964_v25 }
 0x8df   :  { %v837_v28 = vmul.f32 %v835_v26, %v821_v27  ;;  %v1921_v26 = vld [vmem:[%s2829_s8 + $0x2] ss:$0 sm:$0xff] }
 0x8e1   :  { %1811 = vmatmul.msk.f32.gmra.mxu0 %vm850_vm3, %v837_v28  ;;  %v1922_v28 = vld [vmem:[%s2783_s12 + $0x2] ss:$0 sm:$0xff] }
 0x956   :  { %v874_v30 = vpop.f32.mrf.mxu0 }
 0x957   :  { %v875_v31 = vadd.f32 %v1917_v29, %v874_v30  ;;  %v1920_v30 = vld [vmem:[%s2830_s6 + $0x2] ss:$0 sm:$0xff] }
 0x959   :  { %v880_v32 = vadd.f32 %v875_v31, %v781_v56  ;;  %v1828_v56 = vld [vmem:[%s2826_s28 + $0x50] sm:$0xff] }
 0x95a   :  { %1033 = vmatpush.msrb.mxu3 %v1828_v56 }
 0x95b   :  { %v884_v33 = vsel %vm149_vm2, %v880_v32, 0.0 }
 0x95c   :  { %885 = vadd.xlane.f32.xlu2 %v884_v33  ;;  %1034 = vmatpush.msrb.mxu3 %v1827_v59  ;;  %v1924_v59 = vld [vmem:[%s2783_s12 + $0x3] ss:$0 sm:$0xff] }
 0x95e   :  { %v877_v34 = vpop.f32.mrf.mxu0  ;;  %1035 = vmatpush.msrb.mxu3 %v1826_v62 }
 0x95f   :  { %v878_v35 = vadd.f32 %v1917_v29, %v877_v34  ;;  %v1844_v34 = vld [vmem:[%s2824_s3 + $0x78] sm:$0xff] }
 0x961   :  { %v881_v36 = vadd.f32 %v878_v35, %v782_v61  ;;  %v1819_v61 = vld [vmem:[%s2825_s30 + $0x40] sm:$0xff] }
 0x962   :  { %1002 = vmatpush.msrb.mxu2 %v1819_v61 }
 0x963   :  { %v887_v37 = vsel %vm149_vm2, %v881_v36, 0.0 }
 0x964   :  { %888 = vadd.xlane.f32.xlu1 %v887_v37  ;;  %v1843_v37 = vld [vmem:[%s2824_s3 + $0x70] sm:$0xff] }
 0x9cf   :  { %v886_v38 = vpop.xlane.xlu2 %885 }
 0x9d0   :  { %v890_v39 = vmul.f32 %v886_v38, %v2231_v40  ;;  %v1842_v38 = vld [vmem:[%s2824_s3 + $0x68] sm:$0xff] }
 0x9d2   :  { %v892_v41 = vsub.f32 %v880_v32, %v890_v39 }
 0x9d4   :  { %v894_v42 = vmul.f32 %v892_v41, %v892_v41 }
 0x9d6   :  { %v896_v43 = vsel %vm149_vm2, %v894_v42, 0.0 }
 0x9d7   :  { %v889_v44 = vpop.xlane.xlu1 %888  ;;  %897 = vadd.xlane.f32.xlu0 %v896_v43 }
 0x9d8   :  { %v891_v45 = vmul.f32 %v889_v44, %v2231_v40 }
 0x9da   :  { %v2485_v46 = vsub.f32 %v881_v36, %v891_v45  ;;  %v1858_v45 = vld [vmem:[%s2826_s28 + $0x78] sm:$0xff] }
 0x9dc   :  { %v895_v47 = vmul.f32 %v2485_v46, %v2485_v46 }
 0x9de   :  { %v899_v48 = vsel %vm149_vm2, %v895_v47, 0.0 }
 0x9df   :  { %900 = vadd.xlane.f32.xlu2 %v899_v48  ;;  %v1857_v48 = vld [vmem:[%s2826_s28 + $0x70] sm:$0xff] }
 0xa4a   :  { %v898_v63 = vpop.xlane.xlu0 %897 }
 0xa4b   :  { %v902_v0 = vmul.f32 %v898_v63, %v2231_v40 }
 0xa4d   :  { %v904_v1 = vadd.f32 1e-12, %v902_v0 }
 0xa4f   :  { %1965 = vrsqrt.f32 %v904_v1  ;;  %vm912_vm5 = vweird.f32 %v904_v1 }
 0xa52   :  { %v901_v2 = vpop.xlane.xlu2 %900 }
 0xa53   :  { %v903_v3 = vmul.f32 %v901_v2, %v2231_v40 }
 0xa55   :  { %v1966_v4 = vpop.eup %1965  ;;  %v905_v5 = vadd.f32 1e-12, %v903_v3 }
 0xa56   :  { %v907_v6 = vmul.f32 %v1966_v4, %v904_v1  ;;  %vm913_vm4 = vweird.f32 %v1966_v4 }
 0xa57   :  { %1967 = vrsqrt.f32 %v905_v5  ;;  %vm914_vm6 = vmor %vm912_vm5, %vm913_vm4  ;;  %vm922_vm8 = vweird.f32 %v905_v5 }
 0xa58   :  { %v908_v7 = vmul.f32 %v1966_v4, %v907_v6 }
 0xa5a   :  { %v909_v8 = vmul.f32 0.5, %v908_v7 }
 0xa5c   :  { %v910_v9 = vsub.f32 1.5, %v909_v8  ;;  %v1851_v8 = vld [vmem:[%s2825_s30 + $0x78] sm:$0xff] }
 0xa5d   :  { %v1968_v10 = vpop.eup %1967 }
 0xa5e   :  { %v911_v11 = vmul.f32 %v1966_v4, %v910_v9  ;;  %v917_v12 = vmul.f32 %v1968_v10, %v905_v5  ;;  %vm923_vm7 = vweird.f32 %v1968_v10  ;;  %v1850_v9 = vld [vmem:[%s2825_s30 + $0x70] sm:$0xff] }
 0xa5f   :  { %vm924_vm9 = vmor %vm922_vm8, %vm923_vm7  ;;  %vm1676_vm7 = vcmask 1040384   ;;  %vm1741_vm8 = vcmask 25600  }
 0xa60   :  { %v915_v14 = vsel %vm914_vm6, %v1966_v4, %v911_v11  ;;  %v918_v15 = vmul.f32 %v1968_v10, %v917_v12  ;;  %v1848_v11 = vld [vmem:[%s2825_s30 + $0x60] sm:$0xff] }
 0xa61   :  { %v926_v17 = vmul.f32 %v915_v14, %v892_v41  ;;  %v1841_v41 = vld [vmem:[%s2824_s3 + $0x60] sm:$0xff] }
 0xa62   :  { %v919_v18 = vmul.f32 0.5, %v918_v15 }
 0xa63   :  { %v931_v19 = vmul.f32 %v1918_v13, %v926_v17 }
 0xa64   :  { %v920_v20 = vsub.f32 1.5, %v919_v18 }
 0xa65   :  { %v2534_v22 = vadd.f32 %v1919_v16, %v931_v19 }
 0xa66   :  { %v921_v21 = vmul.f32 %v1968_v10, %v920_v20 }
 0xa67   :  { %1817 = vmatmul.msk.f32.vlgmr.msrb.gmra.mxu1 %vm149_vm2, %v2534_v22  ;;  %1824 = vmatmul.msk.f32.vlgmr.msrb.gmra.mxu2 %vm149_vm2, %v2534_v22 }
 0xa68   :  { %v925_v23 = vsel %vm924_vm9, %v1968_v10, %v921_v21  ;;  %1831 = vmatmul.msk.f32.vlgmr.msrb.gmra.mxu3 %vm149_vm2, %v2534_v22  ;;  %v1849_v10 = vld [vmem:[%s2825_s30 + $0x68] sm:$0xff]  ;;  %v1925_v21 = vld [vmem:[%s2829_s8 + $0x3] ss:$0 sm:$0xff] }
 0xa69   :  { %v927_v24 = vmul.f32 %v925_v23, %v2485_v46 }
 0xa6b   :  { %v932_v25 = vmul.f32 %v1918_v13, %v927_v24  ;;  %v1923_v24 = vld [vmem:[%s2830_s6 + $0x3] ss:$0 sm:$0xff] }
 0xa6d   :  { %v2543_v27 = vadd.f32 %v1919_v16, %v932_v25 }
 0xa6f   :  { %1818 = vmatmul.msk.f32.gmra.mxu1 %vm149_vm2, %v2543_v27  ;;  %1825 = vmatmul.msk.f32.gmra.mxu2 %vm149_vm2, %v2543_v27 }
 0xa70   :  { %1832 = vmatmul.msk.f32.gmra.mxu3 %vm149_vm2, %v2543_v27 }
 0xae4   :  { %v971_v29 = vpop.f32.mrf.mxu1 }
 0xae5   :  { %v972_v36 = vadd.f32 %v1920_v30, %v971_v29 }
 0xaea   :  { %v1004_v31 = vpop.f32.mrf.mxu2 }
 0xaeb   :  { %v1005_v32 = vadd.f32 %v1921_v26, %v1004_v31  ;;  %v1037_v33 = vpop.f32.mrf.mxu3 }
 0xaec   :  { %v1038_v35 = vadd.f32 %v1922_v28, %v1037_v33  ;;  %v974_v42 = vpop.f32.mrf.mxu1 }
 0xaed   :  { %1833 = vmatpush.xpose.msk.msra.mxu0 %vm314_vm10, %v1005_v32  ;;  %v975_v47 = vadd.f32 %v1920_v30, %v974_v42 }
 0xaee   :  { %1098 = vmatpush.msra.mxu1 %v1038_v35 }
 0xaf0   :  { %1834 = vmatmul.msk.f32.vlgmr.msra.gmra.mxu0 %vm314_vm10, %v972_v36  ;;  %1221 = vmatpush.msrb.mxu1 %v1851_v8 }
 0xaf1   :  { %1188 = vmatpush.msrb.mxu0 %v1844_v34 }
 0xaf2   :  { %v1007_v39 = vpop.f32.mrf.mxu2  ;;  %1222 = vmatpush.msrb.mxu1 %v1850_v9 }
 0xaf3   :  { %1189 = vmatpush.msrb.mxu0 %v1843_v37  ;;  %v1008_v43 = vadd.f32 %v1921_v26, %v1007_v39  ;;  %v1040_v44 = vpop.f32.mrf.mxu3 }
 0xaf4   :  { %v1041_v46 = vadd.f32 %v1922_v28, %v1040_v44  ;;  %1223 = vmatpush.msrb.mxu1 %v1849_v10 }
 0xaf5   :  { %1190 = vmatpush.msrb.mxu0 %v1842_v38  ;;  %1836 = vmatpush.xpose.msk.msra.mxu2 %vm314_vm10, %v1008_v43 }
 0xaf6   :  { %1158 = vmatpush.msra.mxu3 %v1041_v46  ;;  %1224 = vmatpush.msrb.mxu1 %v1848_v11 }
 0xaf7   :  { %1191 = vmatpush.msrb.mxu0 %v1841_v41 }
 0xaf8   :  { %1837 = vmatmul.msk.f32.vlgmr.msra.gmra.mxu2 %vm314_vm10, %v975_v47  ;;  %1846 = vmatmul.msk.f32.vlgmr.msrb.gmra.mxu0 %vm149_vm2, %v2534_v22 }
 0xaf9   :  { %1254 = vmatpush.msrb.mxu2 %v1858_v45 }
 0xafb   :  { %1255 = vmatpush.msrb.mxu2 %v1857_v48 }
 0xafd   :  { %1256 = vmatpush.msrb.mxu2 %v1856_v49  ;;  %v1840_v49 = vld [vmem:[%s2784_s13 + $0x28] sm:$0xff] }
 0xaff   :  { %1257 = vmatpush.msrb.mxu2 %v1855_v51  ;;  %v1839_v51 = vld [vmem:[%s2784_s13 + $0x20] sm:$0xff] }
 0xb00   :  { %1847 = vmatmul.msk.f32.gmra.mxu0 %vm149_vm2, %v2543_v27  ;;  %1860 = vmatmul.msk.f32.vlgmr.msrb.gmra.mxu2 %vm149_vm2, %v2534_v22 }
 0xb08   :  { %1861 = vmatmul.msk.f32.gmra.mxu2 %vm149_vm2, %v2543_v27 }
 0xb6d   :  { %v1066_v52 = vpop.f32.mrf.mxu0 }
 0xb6e   :  { %v1067_v53 = vadd.f32 %v1066_v52, %v2334_v50 }
 0xb70   :  { %v1069_v55 = vsel %vm341_vm11, %v1067_v53, -inf }
 0xb71   :  { %1070 = vmax.xlane.f32.xlu0 %v1069_v55 }
 0xb75   :  { %v1193_v23 = vpop.f32.mrf.mxu0 }
 0xb76   :  { %v1194_v28 = vadd.f32 %v1923_v24, %v1193_v23  ;;  %v1878_v23 = vld [vmem:[%s2788_s17 + $0x28] sm:$0xff] }
 0xb7b   :  { %v1126_v56 = vpop.f32.mrf.mxu2 }
 0xb7c   :  { %v1127_v57 = vadd.f32 %v1126_v56, %v2338_v54 }
 0xb7d   :  { %v1196_v30 = vpop.f32.mrf.mxu0 }
 0xb7e   :  { %v1129_v58 = vsel %vm341_vm11, %v1127_v57, -inf  ;;  %v1197_v32 = vadd.f32 %v1923_v24, %v1196_v30  ;;  %v1877_v24 = vld [vmem:[%s2788_s17 + $0x20] sm:$0xff] }
 0xb7f   :  { %1130 = vmax.xlane.f32.xlu2 %v1129_v58 }
 0xb83   :  { %v1259_v60 = vpop.f32.mrf.mxu2 }
 0xb84   :  { %v1260_v61 = vadd.f32 %v1924_v59, %v1259_v60  ;;  %v1868_v60 = vld [vmem:[%s2784_s13 + $0x30] sm:$0xff] }
 0xb8b   :  { %v1262_v13 = vpop.f32.mrf.mxu2 }
 0xb8c   :  { %v1263_v16 = vadd.f32 %v1924_v59, %v1262_v13  ;;  %v1869_v59 = vld [vmem:[%s2784_s13 + $0x38] sm:$0xff] }
 0xb8d   :  { %1408 = vmatpush.msra.mxu2 %v1869_v59  ;;  %v1887_v59 = vld [vmem:[%s2790_s19 + $0x58] sm:$0xff] }
 0xb8f   :  { %1409 = vmatpush.msra.mxu2 %v1868_v60  ;;  %v1886_v60 = vld [vmem:[%s2790_s19 + $0x50] sm:$0xff] }
 0xbe4   :  { %v1071_v62 = vpop.xlane.xlu0 %1070 }
 0xbe5   :  { %v1072_v63 = vsub.f32 %v1067_v53, %v1071_v62 }
 0xbe7   :  { %v1073_v0 = vmul.f32 1.442695, %v1072_v63 }
 0xbe9   :  { %1969 = vpow2.f32 %v1073_v0  ;;  %v1926_v0 = vld [vmem:[%s2785_s14 + $0x1] ss:$0 sm:$0xff] }
 0xbef   :  { %v1970_v1 = vpop.eup %1969 }
 0xbf0   :  { %v1075_v2 = vsel %vm341_vm11, %v1970_v1, 0.0 }
 0xbf1   :  { %1076 = vadd.xlane.f32.xlu1 %v1075_v2 }
 0xbf2   :  { %v1131_v3 = vpop.xlane.xlu2 %1130 }
 0xbf3   :  { %v1132_v4 = vsub.f32 %v1127_v57, %v1131_v3 }
 0xbf5   :  { %v1133_v5 = vmul.f32 1.442695, %v1132_v4 }
 0xbf7   :  { %1971 = vpow2.f32 %v1133_v5 }
 0xbfd   :  { %v1972_v6 = vpop.eup %1971 }
 0xbfe   :  { %v1135_v7 = vsel %vm341_vm11, %v1972_v6, 0.0 }
 0xbff   :  { %1136 = vadd.xlane.f32.xlu0 %v1135_v7 }
 0xc64   :  { %v1077_v12 = vpop.xlane.xlu1 %1076 }
 0xc65   :  { %1973 = vrcp.f32 %v1077_v12 }
 0xc6b   :  { %v1974_v14 = vpop.eup %1973 }
 0xc6c   :  { %v1079_v15 = vmul.f32 %v1974_v14, %v1970_v1 }
 0xc6e   :  { %1835 = vmatmul.msk.f32.vlgmr.msra.gmra.mxu1 %vm341_vm11, %v1079_v15 }
 0xc6f   :  { %1380 = vmatpush.msra.mxu1 %v1263_v16 }
 0xc72   :  { %v1137_v17 = vpop.xlane.xlu0 %1136 }
 0xc73   :  { %1975 = vrcp.f32 %v1137_v17 }
 0xc76   :  { %1853 = vmatmul.msk.f32.vlgmr.msrb.gmra.mxu1 %vm149_vm2, %v2534_v22 }
 0xc79   :  { %v1976_v18 = vpop.eup %1975 }
 0xc7a   :  { %v1139_v19 = vmul.f32 %v1976_v18, %v1972_v6 }
 0xc7c   :  { %1838 = vmatmul.msk.f32.vlgmr.msra.gmra.mxu3 %vm341_vm11, %v1139_v19 }
 0xc7e   :  { %1854 = vmatmul.msk.f32.gmra.mxu1 %vm149_vm2, %v2543_v27 }
 0xceb   :  { %v1100_v20 = vpop.f32.mrf.mxu1 }
 0xcf3   :  { %v1226_v25 = vpop.f32.mrf.mxu1 }
 0xcf4   :  { %v1227_v26 = vadd.f32 %v1925_v21, %v1226_v25 }
 0xcf6   :  { %1862 = vmatpush.xpose.msk.msrb.mxu3 %vm314_vm10, %v1227_v26 }
 0xcf9   :  { %1863 = vmatmul.msk.f32.vlgmr.msrb.gmra.mxu3 %vm314_vm10, %v1194_v28 }
 0xcfa   :  { %1320 = vmatpush.msra.mxu3 %v1260_v61 }
 0xcfb   :  { %v1229_v29 = vpop.f32.mrf.mxu1 }
 0xcfc   :  { %v1230_v31 = vadd.f32 %v1925_v21, %v1229_v29  ;;  %1437 = vmatpush.msrb.mxu3 %v1840_v49  ;;  %v1879_v21 = vld [vmem:[%s2788_s17 + $0x30] sm:$0xff] }
 0xcfe   :  { %1865 = vmatpush.xpose.msk.msra.mxu0 %vm314_vm10, %v1230_v31  ;;  %1438 = vmatpush.msrb.mxu3 %v1839_v51 }
 0xcff   :  { %v1160_v33 = vpop.f32.mrf.mxu3 }
 0xd01   :  { %1866 = vmatmul.msk.f32.vlgmr.msra.gmra.mxu0 %vm314_vm10, %v1197_v32 }
 0xd7c   :  { %v1288_v34 = vpop.f32.mrf.mxu3 }
 0xd7d   :  { %v1289_v35 = vadd.f32 %v1288_v34, %v2334_v50 }
 0xd7e   :  { %v1348_v36 = vpop.f32.mrf.mxu0 }
 0xd7f   :  { %v1349_v37 = vadd.f32 %v1348_v36, %v2338_v54  ;;  %v1291_v38 = vsel %vm341_vm11, %v1289_v35, -inf }
 0xd80   :  { %1292 = vmax.xlane.f32.xlu1 %v1291_v38 }
 0xd81   :  { %v1351_v39 = vsel %vm341_vm11, %v1349_v37, -inf }
 0xd82   :  { %1352 = vmax.xlane.f32.xlu2 %v1351_v39 }
 0xdf3   :  { %v1293_v41 = vpop.xlane.xlu1 %1292 }
 0xdf4   :  { %v1294_v42 = vsub.f32 %v1289_v35, %v1293_v41  ;;  %v1927_v41 = vld [vmem:[%s2786_s15 + $0x1] ss:$0 sm:$0xff] }
 0xdf5   :  { %v1353_v43 = vpop.xlane.xlu2 %1352 }
 0xdf6   :  { %v1295_v44 = vmul.f32 1.442695, %v1294_v42  ;;  %v1354_v45 = vsub.f32 %v1349_v37, %v1353_v43 }
 0xdf8   :  { %1977 = vpow2.f32 %v1295_v44  ;;  %v1355_v46 = vmul.f32 1.442695, %v1354_v45  ;;  %v1928_v45 = vld [vmem:[%s2787_s16 + $0x1] ss:$0 sm:$0xff] }
 0xdfa   :  { %1979 = vpow2.f32 %v1355_v46 }
 0xdfe   :  { %v1978_v47 = vpop.eup %1977 }
 0xdff   :  { %v1297_v50 = vsel %vm341_vm11, %v1978_v47, 0.0 }
 0xe00   :  { %v1980_v48 = vpop.eup %1979  ;;  %1298 = vadd.xlane.f32.xlu0 %v1297_v50 }
 0xe01   :  { %v1357_v54 = vsel %vm341_vm11, %v1980_v48, 0.0 }
 0xe02   :  { %1358 = vadd.xlane.f32.xlu1 %v1357_v54 }
 0xe73   :  { %v1299_v52 = vpop.xlane.xlu0 %1298 }
 0xe74   :  { %1981 = vrcp.f32 %v1299_v52 }
 0xe75   :  { %v1359_v53 = vpop.xlane.xlu1 %1358 }
 0xe76   :  { %1983 = vrcp.f32 %v1359_v53 }
 0xe7a   :  { %v1982_v55 = vpop.eup %1981 }
 0xe7b   :  { %v1301_v56 = vmul.f32 %v1982_v55, %v1978_v47  ;;  %v1891_v55 = vld [vmem:[%s2790_s19 + $0x78] sm:$0xff] }
 0xe7c   :  { %v1984_v57 = vpop.eup %1983  ;;  %1598 = vmatpush.msrb.mxu1 %v1891_v55 }
 0xe7d   :  { %v1361_v58 = vmul.f32 %v1984_v57, %v1980_v48  ;;  %1864 = vmatmul.msk.f32.vlgmr.msra.gmra.mxu3 %vm341_vm11, %v1301_v56  ;;  %v1890_v56 = vld [vmem:[%s2790_s19 + $0x70] sm:$0xff]  ;;  %v1889_v57 = vld [vmem:[%s2790_s19 + $0x68] sm:$0xff] }
 0xe7e   :  { %1599 = vmatpush.msrb.mxu1 %v1890_v56 }
 0xe7f   :  { %1867 = vmatmul.msk.f32.vlgmr.msra.gmra.mxu1 %vm341_vm11, %v1361_v58  ;;  %v1888_v58 = vld [vmem:[%s2790_s19 + $0x60] sm:$0xff] }
 0xe80   :  { %1600 = vmatpush.msrb.mxu1 %v1889_v57 }
 0xe82   :  { %1601 = vmatpush.msrb.mxu1 %v1888_v58 }
 0xe84   :  { %1602 = vmatpush.msrb.mxu1 %v1887_v59 }
 0xe85   :  { %1872 = vmatmul.msk.f32.vlgmr.msrb.gmra.mxu3 %vm314_vm10, %v1100_v20 }
 0xe86   :  { %1603 = vmatpush.msrb.mxu1 %v1886_v60 }
 0xe8d   :  { %1873 = vmatmul.msk.f32.gmra.mxu3 %vm314_vm10, %v1160_v33 }
 0xefc   :  { %v1382_v62 = vpop.f32.mrf.mxu1 }
 0xf00   :  { %v1322_v61 = vpop.f32.mrf.mxu3 }
 0xf01   :  { %1870 = vmatmul.msk.f32.vlgmr.msra.gmra.mxu2 %vm314_vm10, %v1322_v61  ;;  %v1885_v61 = vld [vmem:[%s2790_s19 + $0x48] sm:$0xff] }
 0xf02   :  { %1604 = vmatpush.msrb.mxu1 %v1885_v61 }
 0xf08   :  { %v1440_v63 = vpop.f32.mrf.mxu3 }
 0xf09   :  { %1871 = vmatmul.msk.f32.gmra.mxu2 %vm314_vm10, %v1382_v62  ;;  %v1884_v62 = vld [vmem:[%s2790_s19 + $0x40] sm:$0xff] }
 0xf0a   :  { %1605 = vmatpush.msrb.mxu1 %v1884_v62 }
 0xf10   :  { %v1443_v6 = vpop.f32.mrf.mxu3 }
 0xf84   :  { %v1411_v1 = vpop.f32.mrf.mxu2 }
 0xf85   :  { %v1441_v2 = vadd.f32 %v1440_v63, %v1411_v1  ;;  %v1929_v63 = vld [vmem:[%s2789_s18 + $0x1] ss:$0 sm:$0xff] }
 0xf87   :  { %v1451_v3 = vadd.f32 %v1926_v0, %v1441_v2 }
 0xf89   :  { %v1453_v4 = vadd.f32 %v1451_v3, %v2534_v22 }
 0xf8b   :  { %v1459_v5 = vsel %vm149_vm2, %v1453_v4, 0.0 }
 0xf8c   :  { %1460 = vadd.xlane.f32.xlu2 %v1459_v5  ;;  %v1414_v7 = vpop.f32.mrf.mxu2 }
 0xf8d   :  { %v1444_v8 = vadd.f32 %v1443_v6, %v1414_v7 }
 0xf8f   :  { %v1452_v9 = vadd.f32 %v1926_v0, %v1444_v8 }
 0xf91   :  { %v1454_v10 = vadd.f32 %v1452_v9, %v2543_v27  ;;  %v1880_v27 = vld [vmem:[%s2788_s17 + $0x38] sm:$0xff]  ;;  %s2028_s17 = smov [#allocation2]  }
 0xf92   :  { %1541 = vmatpush.msrb.mxu0 %v1880_v27  ;;  %v1930_v27 = vld [vmem:[%s2791_s20 + $0x1] ss:$0 sm:$0xff]  ;;  %s1748_s18 = sshll.u32 %s2028_s17, 4  ;;  %s1750_s20 = sshll.u32 %s2798_s27, 4  ;;  %s1749_s18 = int_to_ptr.vmem [resolvable:$true] %s1748_s18  ;;  %s1751_s20 = int_to_ptr.hbm [resolvable:$true] %s1750_s20 }
 0xf93   :  { %v1462_v11 = vsel %vm149_vm2, %v1454_v10, 0.0 }
 0xf94   :  { %1463 = vadd.xlane.f32.xlu0 %v1462_v11  ;;  %1542 = vmatpush.msrb.mxu0 %v1879_v21 }
 0xf96   :  { %1543 = vmatpush.msrb.mxu0 %v1878_v23 }
 0xf98   :  { %1544 = vmatpush.msrb.mxu0 %v1877_v24 }
 0xfff   :  { %v1461_v12 = vpop.xlane.xlu2 %1460 }
0x1000   :  { %v1465_v13 = vmul.f32 %v1461_v12, %v2231_v40 }
0x1002   :  { %v1467_v14 = vsub.f32 %v1453_v4, %v1465_v13 }
0x1004   :  { %v1469_v15 = vmul.f32 %v1467_v14, %v1467_v14 }
0x1006   :  { %v1471_v16 = vsel %vm149_vm2, %v1469_v15, 0.0 }
0x1007   :  { %v1464_v22 = vpop.xlane.xlu0 %1463  ;;  %1472 = vadd.xlane.f32.xlu1 %v1471_v16 }
0x1008   :  { %v1466_v17 = vmul.f32 %v1464_v22, %v2231_v40 }
0x100a   :  { %v1468_v18 = vsub.f32 %v1454_v10, %v1466_v17 }
0x100c   :  { %v1470_v19 = vmul.f32 %v1468_v18, %v1468_v18 }
0x100e   :  { %v1474_v20 = vsel %vm149_vm2, %v1470_v19, 0.0 }
0x100f   :  { %1475 = vadd.xlane.f32.xlu2 %v1474_v20 }
0x107a   :  { %v1473_v25 = vpop.xlane.xlu1 %1472 }
0x107b   :  { %v1477_v26 = vmul.f32 %v1473_v25, %v2231_v40 }
0x107d   :  { %v1479_v28 = vadd.f32 1e-12, %v1477_v26 }
0x107f   :  { %1985 = vrsqrt.f32 %v1479_v28  ;;  %vm1487_vm11 = vweird.f32 %v1479_v28 }
0x1082   :  { %v1476_v29 = vpop.xlane.xlu2 %1475 }
0x1083   :  { %v1478_v30 = vmul.f32 %v1476_v29, %v2231_v40 }
0x1085   :  { %v1986_v31 = vpop.eup %1985  ;;  %v1480_v32 = vadd.f32 1e-12, %v1478_v30 }
0x1086   :  { %v1482_v33 = vmul.f32 %v1986_v31, %v1479_v28  ;;  %vm1488_vm10 = vweird.f32 %v1986_v31 }
0x1087   :  { %1987 = vrsqrt.f32 %v1480_v32  ;;  %vm1489_vm12 = vmor %vm1487_vm11, %vm1488_vm10  ;;  %vm1497_vm14 = vweird.f32 %v1480_v32 }
0x1088   :  { %v1483_v34 = vmul.f32 %v1986_v31, %v1482_v33 }
0x108a   :  { %v1484_v35 = vmul.f32 0.5, %v1483_v34 }
0x108c   :  { %v1485_v36 = vsub.f32 1.5, %v1484_v35 }
0x108d   :  { %v1988_v37 = vpop.eup %1987 }
0x108e   :  { %v1486_v38 = vmul.f32 %v1986_v31, %v1485_v36  ;;  %v1492_v39 = vmul.f32 %v1988_v37, %v1480_v32  ;;  %vm1498_vm13 = vweird.f32 %v1988_v37 }
0x108f   :  { %vm1499_vm15 = vmor %vm1497_vm14, %vm1498_vm13 }
0x1090   :  { %v1490_v42 = vsel %vm1489_vm12, %v1986_v31, %v1486_v38  ;;  %v1493_v43 = vmul.f32 %v1988_v37, %v1492_v39 }
0x1091   :  { %v1501_v44 = vmul.f32 %v1490_v42, %v1467_v14 }
0x1092   :  { %v1494_v46 = vmul.f32 0.5, %v1493_v43 }
0x1093   :  { %v1506_v47 = vmul.f32 %v1927_v41, %v1501_v44  ;;  %v1681_v44 = vld [vmem:[%s2794_s23 + $0x18] sm:$0xff] }
0x1094   :  { %v1495_v50 = vsub.f32 1.5, %v1494_v46  ;;  %1701 = vmatpush.msrb.mxu2 %v1681_v44 }
0x1095   :  { %v1511_v48 = vadd.f32 %v1928_v45, %v1506_v47  ;;  %v1679_v47 = vld [vmem:[%s2794_s23 + $0x8] sm:$0xff] }
0x1096   :  { %v1496_v54 = vmul.f32 %v1988_v37, %v1495_v50  ;;  %v1678_v50 = vld [vmem:[%s2794_s23] sm:$0xff] }
0x1097   :  { %1882 = vmatmul.msk.f32.vlgmr.msrb.gmra.mxu0 %vm149_vm2, %v1511_v48 }
0x1098   :  { %v1500_v49 = vsel %vm1499_vm15, %v1988_v37, %v1496_v54 }
0x1099   :  { %v1502_v51 = vmul.f32 %v1500_v49, %v1468_v18 }
0x109b   :  { %v1507_v52 = vmul.f32 %v1927_v41, %v1502_v51 }
0x109d   :  { %v1512_v53 = vadd.f32 %v1928_v45, %v1507_v52  ;;  %v1680_v45 = vld [vmem:[%s2794_s23 + $0x10] sm:$0xff] }
0x109e   :  { %1702 = vmatpush.msrb.mxu2 %v1680_v45 }
0x109f   :  { %1883 = vmatmul.msk.f32.gmra.mxu0 %vm149_vm2, %v1512_v53 }
0x10a0   :  { %1703 = vmatpush.msrb.mxu2 %v1679_v47 }
0x10a2   :  { %1704 = vmatpush.msrb.mxu2 %v1678_v50 }
0x1114   :  { %v1546_v0 = vpop.f32.mrf.mxu0 }
0x1115   :  { %v1547_v1 = vadd.f32 %v1929_v63, %v1546_v0 }
0x1117   :  { %v1554_v2 = vmul.f32 0.044715, %v1547_v1  ;;  %v1552_v15 = vmul.f32 0.5, %v1547_v1 }
0x1119   :  { %v1556_v3 = vmul.f32 %v1554_v2, %v1547_v1 }
0x111b   :  { %v1558_v4 = vmul.f32 %v1556_v3, %v1547_v1 }
0x111c   :  { %v1549_v5 = vpop.f32.mrf.mxu0 }
0x111d   :  { %v1560_v6 = vadd.f32 %v1558_v4, %v1547_v1  ;;  %v1550_v7 = vadd.f32 %v1929_v63, %v1549_v5 }
0x111f   :  { %v1562_v8 = vmul.f32 0.7978846, %v1560_v6  ;;  %v1555_v9 = vmul.f32 0.044715, %v1550_v7  ;;  %v1553_v18 = vmul.f32 0.5, %v1550_v7 }
0x1120   :  { %v1932_v6 = vld [vmem:[%s2832_s4 + $0x1] ss:$0 sm:$0xff] }
0x1121   :  { %1989 = vtanh.f32 %v1562_v8  ;;  %v1557_v10 = vmul.f32 %v1555_v9, %v1550_v7 }
0x1123   :  { %v1559_v11 = vmul.f32 %v1557_v10, %v1550_v7 }
0x1125   :  { %v1561_v12 = vadd.f32 %v1559_v11, %v1550_v7  ;;  %v1713_v11 = vld [vmem:[%s2796_s25 + $0x18] sm:$0xff] }
0x1126   :  { %1733 = vmatpush.msra.mxu3 %v1713_v11 }
0x1127   :  { %v1990_v13 = vpop.eup %1989  ;;  %v1563_v14 = vmul.f32 0.7978846, %v1561_v12  ;;  %v1712_v12 = vld [vmem:[%s2796_s25 + $0x10] sm:$0xff] }
0x1128   :  { %v1566_v16 = vadd.f32 1.0, %v1990_v13  ;;  %v1711_v13 = vld [vmem:[%s2796_s25 + $0x8] sm:$0xff]  ;;  %1734 = vmatpush.msra.mxu3 %v1712_v12 }
0x1129   :  { %1991 = vtanh.f32 %v1563_v14  ;;  %v1710_v14 = vld [vmem:[%s2796_s25] sm:$0xff] }
0x112a   :  { %v1568_v22 = vmul.f32 %v1566_v16, %v1552_v15  ;;  %1735 = vmatpush.msra.mxu3 %v1711_v13  ;;  %v1933_v15 = vld [vmem:[%s2795_s24] ss:$0 sm:$0xff] }
0x112c   :  { %1893 = vmatmul.msk.f32.vlgmr.msrb.gmra.mxu1 %vm850_vm3, %v1568_v22  ;;  %1736 = vmatpush.msra.mxu3 %v1710_v14 }
0x112f   :  { %v1992_v17 = vpop.eup %1991 }
0x1130   :  { %v1567_v19 = vadd.f32 1.0, %v1992_v17 }
0x1132   :  { %v1569_v20 = vmul.f32 %v1567_v19, %v1553_v18  ;;  %v1934_v18 = vld [vmem:[%s2797_s26] ss:$0 sm:$0xff] }
0x1134   :  { %1894 = vmatmul.msk.f32.gmra.mxu1 %vm850_vm3, %v1569_v20 }
0x11a9   :  { %v1607_v21 = vpop.f32.mrf.mxu1 }
0x11aa   :  { %v1608_v23 = vadd.f32 %v1930_v27, %v1607_v21 }
0x11ac   :  { %v1613_v24 = vadd.f32 %v1608_v23, %v1511_v48 }
0x11ae   :  { %v1619_v25 = vsel %vm149_vm2, %v1613_v24, 0.0 }
0x11af   :  { %1620 = vadd.xlane.f32.xlu1 %v1619_v25 }
0x11b1   :  { %v1610_v26 = vpop.f32.mrf.mxu1 }
0x11b2   :  { %v1611_v28 = vadd.f32 %v1930_v27, %v1610_v26 }
0x11b4   :  { %v1614_v29 = vadd.f32 %v1611_v28, %v1512_v53 }
0x11b6   :  { %v1622_v30 = vsel %vm149_vm2, %v1614_v29, 0.0 }
0x11b7   :  { %1623 = vadd.xlane.f32.xlu0 %v1622_v30 }
0x1222   :  { %v1621_v31 = vpop.xlane.xlu1 %1620 }
0x1223   :  { %v1625_v32 = vmul.f32 %v1621_v31, %v2231_v40 }
0x1225   :  { %v1627_v33 = vsub.f32 %v1613_v24, %v1625_v32 }
0x1227   :  { %v1629_v34 = vmul.f32 %v1627_v33, %v1627_v33 }
0x1229   :  { %v1631_v35 = vsel %vm149_vm2, %v1629_v34, 0.0 }
0x122a   :  { %1632 = vadd.xlane.f32.xlu0 %v1631_v35  ;;  %v1624_v36 = vpop.xlane.xlu0 %1623 }
0x122b   :  { %v1626_v37 = vmul.f32 %v1624_v36, %v2231_v40 }
0x122d   :  { %v1628_v38 = vsub.f32 %v1614_v29, %v1626_v37 }
0x122f   :  { %v1630_v39 = vmul.f32 %v1628_v38, %v1628_v38 }
0x1231   :  { %v1634_v41 = vsel %vm149_vm2, %v1630_v39, 0.0 }
0x1232   :  { %1635 = vadd.xlane.f32.xlu2 %v1634_v41 }
0x129d   :  { %v1633_v42 = vpop.xlane.xlu0 %1632 }
0x129e   :  { %v1637_v43 = vmul.f32 %v1633_v42, %v2231_v40 }
0x12a0   :  { %v1639_v46 = vadd.f32 1e-12, %v1637_v43 }
0x12a2   :  { %1993 = vrsqrt.f32 %v1639_v46  ;;  %vm1647_vm1 = vweird.f32 %v1639_v46 }
0x12a5   :  { %v1636_v48 = vpop.xlane.xlu2 %1635 }
0x12a6   :  { %v1638_v54 = vmul.f32 %v1636_v48, %v2231_v40  ;;  %v1931_v40 = vld [vmem:[%s2792_s21 + $0x1] ss:$0 sm:$0xff] }
0x12a8   :  { %v1994_v49 = vpop.eup %1993  ;;  %v1640_v51 = vadd.f32 1e-12, %v1638_v54 }
0x12a9   :  { %v1642_v52 = vmul.f32 %v1994_v49, %v1639_v46  ;;  %vm1648_vm0 = vweird.f32 %v1994_v49 }
0x12aa   :  { %1995 = vrsqrt.f32 %v1640_v51  ;;  %vm1649_vm3 = vmor %vm1647_vm1, %vm1648_vm0  ;;  %vm1657_vm5 = vweird.f32 %v1640_v51 }
0x12ab   :  { %v1643_v53 = vmul.f32 %v1994_v49, %v1642_v52 }
0x12ad   :  { %v1644_v55 = vmul.f32 0.5, %v1643_v53 }
0x12af   :  { %v1645_v56 = vsub.f32 1.5, %v1644_v55 }
0x12b0   :  { %v1996_v57 = vpop.eup %1995 }
0x12b1   :  { %v1652_v58 = vmul.f32 %v1996_v57, %v1640_v51  ;;  %v1646_v59 = vmul.f32 %v1994_v49, %v1645_v56  ;;  %vm1658_vm4 = vweird.f32 %v1996_v57 }
0x12b2   :  { %vm1659_vm6 = vmor %vm1657_vm5, %vm1658_vm4 }
0x12b3   :  { %v1653_v60 = vmul.f32 %v1996_v57, %v1652_v58  ;;  %v1650_v62 = vsel %vm1649_vm3, %v1994_v49, %v1646_v59 }
0x12b4   :  { %v1661_v1 = vmul.f32 %v1650_v62, %v1627_v33 }
0x12b5   :  { %v1654_v61 = vmul.f32 0.5, %v1653_v60 }
0x12b6   :  { %v1666_v4 = vmul.f32 %v1931_v40, %v1661_v1 }
0x12b7   :  { %v1655_v63 = vsub.f32 1.5, %v1654_v61 }
0x12b8   :  { %v1671_v8 = vadd.f32 %v1932_v6, %v1666_v4 }
0x12b9   :  { %v1656_v0 = vmul.f32 %v1996_v57, %v1655_v63 }
0x12bb   :  { %v1660_v2 = vsel %vm1659_vm6, %v1996_v57, %v1656_v0 }
0x12bc   :  { %v1662_v3 = vmul.f32 %v1660_v2, %v1628_v38 }
0x12be   :  { %v1667_v5 = vmul.f32 %v1931_v40, %v1662_v3 }
0x12c0   :  { %v1672_v7 = vadd.f32 %v1932_v6, %v1667_v5 }
0x12c2   :  { %v1674_v9 = vrot.slane %v1672_v7, 7 }
0x12c4   :  { %v1677_v10 = vsel %vm1676_vm7, %v1671_v8, %v1674_v9 }
0x12c5   :  { %1897 = vmatmul.msk.f32.vlgmr.msrb.gmra.mxu2 %vm149_vm2, %v1677_v10 }
0x1348   :  { %v1706_v16 = vpop.f32.mrf.mxu2 }
0x1349   :  { %v1707_v22 = vadd.f32 %v1933_v15, %v1706_v16 }
0x134b   :  { %1997 = vtanh.f32 %v1707_v22 }
0x1351   :  { %v1998_v17 = vpop.eup %1997 }
0x1352   :  { %1898 = vmatmul.msk.f32.vlgmr.msra.gmra.mxu3 %vm149_vm2, %v1998_v17 }
0x13d5   :  { %v1738_v19 = vpop.f32.mrf.mxu3 }
0x13d6   :  { %v1739_v20 = vadd.f32 %v1934_v18, %v1738_v19 }
0x13d8   :  { %1742 = vst.msk [vmem:[#allocation2] sm:$0x3] %vm1741_vm8, %v1739_v20 }
0x13d9   :  { %1753 = dma.vmem_to_hbm [thread:$0]  %s1749_s18, 32, %s1751_s20, [#allocation3]  }
0x13da   :  { %2023 = dma.done.wait [#allocation3], 32  }
0x13db   :  { %2024 = vsyncadd [#allocation3], 4294967264 }
0x13dc   :  { %1758 = vsyncpa [#allocation3], 1 }

</bundles_post_ra>
